<compile_context>
chip_gen: v6e
topology: v6e:2x2x1
jax: 0.10.0
libtpu: 0.0.40
codegen_flags: <defaults>
</compile_context>

<pallas_src>
import functools
import math

import jax
import jax.numpy as jnp
from jax.experimental import pallas as pl
from jax.experimental.pallas import tpu as pltpu


# --------------------------------------------------------------------------------------
# Pass 1: fused Q/K + V projection, one grid step per batch row.
# --------------------------------------------------------------------------------------
def _qkv_proj_kernel(src_ref, pos_ref,          # (1, S, D)
                     wqk_ref, bqk_ref,          # (D, 2D) bf16, (1, 2D) f32
                     wv_ref, bv_ref,            # (D, D) bf16, (1, D) f32
                     q_out, kt_out, v_out,      # (1,H,S,dh), (1,H,dh,S), (1,H,S,dh) bf16
                     *, nhead: int):
    S, D = src_ref.shape[1], src_ref.shape[2]
    H = nhead
    dh = D // H
    scale = 1.0 / math.sqrt(dh)

    src_f = src_ref[0].astype(jnp.float32)
    pos_f = pos_ref[0].astype(jnp.float32)
    qk_in = (src_f + pos_f).astype(jnp.bfloat16)                       # q = k = src + pos

    qk = jnp.dot(qk_in, wqk_ref[...],
                 preferred_element_type=jnp.float32) + bqk_ref[...]    # (S, 2D) f32
    q = qk[:, :D] * scale
    k = qk[:, D:]
    v = jnp.dot(src_f.astype(jnp.bfloat16), wv_ref[...],
                preferred_element_type=jnp.float32) + bv_ref[...]      # value = src

    q_out[0] = q.reshape(S, H, dh).transpose(1, 0, 2).astype(jnp.bfloat16)   # (H, S, dh)
    kt_out[0] = k.reshape(S, H, dh).transpose(1, 2, 0).astype(jnp.bfloat16)  # (H, dh, S)
    v_out[0] = v.reshape(S, H, dh).transpose(1, 0, 2).astype(jnp.bfloat16)   # (H, S, dh)


# --------------------------------------------------------------------------------------
# Pass 2: attention + out-proj + LN1 + FFN + LN2 over (batch, query-tile) grid.
# --------------------------------------------------------------------------------------
def _attn_ffn_kernel(src_ref,                    # (1, TS, D)
                     q_ref,                      # (1, H, TS, dh) bf16 (pre-scaled)
                     kt_ref,                     # (1, H, dh, S)  bf16
                     v_ref,                      # (1, H, S, dh)  bf16
                     wo_ref, bo_ref,             # (D, D) bf16, (1, D) f32
                     w1_ref, b1_ref,             # (D, FF) bf16, (1, FF) f32
                     w2_ref, b2_ref,             # (FF, D) bf16, (1, D) f32
                     g1_ref, beta1_ref, g2_ref, beta2_ref,   # (1, D) f32
                     out_ref,                    # (1, TS, D)
                     *, nhead: int):
    eps = 1e-5
    TS, D = src_ref.shape[1], src_ref.shape[2]
    H = nhead

    qh = q_ref[0]                                # (H, TS, dh) bf16, scale already applied
    kt = kt_ref[0]                               # (H, dh, S)  bf16
    vh = v_ref[0]                                # (H, S, dh)  bf16

    scores = jnp.einsum('hqd,hds->hqs', qh, kt,
                        preferred_element_type=jnp.float32)            # (H, TS, S)
    scores = scores - jnp.max(scores, axis=-1, keepdims=True)
    p = jnp.exp(scores)
    p = p * pl.reciprocal(jnp.sum(p, axis=-1, keepdims=True), approx=True)

    attn = jnp.einsum('hqs,hsd->hqd', p.astype(jnp.bfloat16), vh,
                      preferred_element_type=jnp.float32)              # (H, TS, dh)
    attn = attn.transpose(1, 0, 2).reshape(TS, D)                      # (TS, D) f32

    attn = jnp.dot(attn.astype(jnp.bfloat16), wo_ref[...],
                   preferred_element_type=jnp.float32) + bo_ref[...]

    # residual + norm1 (dropout1 == identity)
    src_q = src_ref[0].astype(jnp.float32)
    x = src_q + attn
    mu = jnp.mean(x, axis=-1, keepdims=True)
    var = jnp.mean((x - mu) ** 2, axis=-1, keepdims=True)
    x = (x - mu) * jax.lax.rsqrt(var + eps)
    x = x * g1_ref[...] + beta1_ref[...]

    # feed-forward: linear1 -> LeakyReLU(0.01) -> (dropout == identity) -> linear2
    h = jnp.dot(x.astype(jnp.bfloat16), w1_ref[...],
                preferred_element_type=jnp.float32) + b1_ref[...]
    h = jnp.where(h >= 0.0, h, 0.01 * h)
    ff = jnp.dot(h.astype(jnp.bfloat16), w2_ref[...],
                 preferred_element_type=jnp.float32) + b2_ref[...]

    # residual + norm2 (dropout2 == identity)
    y = x + ff
    mu2 = jnp.mean(y, axis=-1, keepdims=True)
    var2 = jnp.mean((y - mu2) ** 2, axis=-1, keepdims=True)
    y = (y - mu2) * jax.lax.rsqrt(var2 + eps)
    y = y * g2_ref[...] + beta2_ref[...]

    out_ref[0] = y.astype(out_ref.dtype)


# --------------------------------------------------------------------------------------
# Generation-aware tiling / VMEM budgeting.
# --------------------------------------------------------------------------------------
def _vmem_capacity_bytes():
    try:
        cap = int(pltpu.get_tpu_info().vmem_capacity_bytes)
        if cap > 0:
            return cap
    except Exception:
        pass
    return 128 << 20


def _attn_fixed_bytes(S, D, FF):
    f32, bf16 = 4, 2
    kv = 2 * 2 * S * D * bf16                                # K^T + V, double-buffered over batch
    wgt = (D * D + 2 * D * FF) * bf16 + (6 * D + FF) * f32   # main-pass weights / biases / LN
    return kv + 2 * wgt                                      # conservative (2x if not Buffered(1))


def _attn_tile_bytes(TS, S, D, FF, H):
    f32, bf16 = 4, 2
    blocks = 2 * (TS * D * f32 + TS * D * bf16 + TS * D * f32)   # src / q / out (double-buffered)
    temps = (2 * H * TS * S * f32          # scores + probs
             + 2 * TS * FF * f32           # FFN hidden
             + 8 * TS * D * f32)           # attn / residual / LN temporaries
    return blocks + temps


def _proj_bytes(S, D):
    f32, bf16 = 4, 2
    blocks = 2 * (2 * S * D * f32 + 3 * S * D * bf16)
    wgt = 2 * (3 * D * D * bf16 + 3 * D * f32)
    temps = 8 * S * D * f32
    return blocks + wgt + temps


def _pick_q_tile(S, D, FF, H, vmem_cap):
    budget = int(0.70 * vmem_cap)
    fixed = _attn_fixed_bytes(S, D, FF)
    cands = [c for c in (512, 256, 128, 64, 32, 16, 8) if S % c == 0]
    if not cands:
        # TODO(synk): pad/mask ragged sequence lengths instead of a full-S query tile.
        return S
    for ts in cands:
        if fixed + _attn_tile_bytes(ts, S, D, FF, H) <= budget:
            return ts
    return cands[-1]


def _vmem_limit_bytes(est_bytes, vmem_cap):
    hi = max(int(0.90 * vmem_cap), 32 << 20)
    return int(min(max(est_bytes + (8 << 20), 32 << 20), hi))


# --------------------------------------------------------------------------------------
# Wrapper.
# --------------------------------------------------------------------------------------
def _build_forward(src, pos, params, nhead, single_buffer_weights):
    B, S, D = src.shape
    assert D % nhead == 0
    H = nhead
    dh = D // H
    FF = params['w1'].shape[1]

    vmem_cap = _vmem_capacity_bytes()
    TS = _pick_q_tile(S, D, FF, H, vmem_cap)
    n_qt = S // TS

    def wspec1(arr):   # grid-invariant weight, grid rank 1
        nd = arr.ndim
        idx = lambda b, _n=nd: (0,) * _n
        if single_buffer_weights:
            return pl.BlockSpec(arr.shape, idx, pipeline_mode=pl.Buffered(1))
        return pl.BlockSpec(arr.shape, idx)

    def wspec2(arr):   # grid-invariant weight, grid rank 2
        nd = arr.ndim
        idx = lambda b, qt, _n=nd: (0,) * _n
        if single_buffer_weights:
            return pl.BlockSpec(arr.shape, idx, pipeline_mode=pl.Buffered(1))
        return pl.BlockSpec(arr.shape, idx)

    # ---------------- pass 1: head-major bf16 Q / K^T / V caches ----------------
    proj_weights = [params['wqk'], params['bqk'], params['wv'], params['bv']]
    seq1 = pl.BlockSpec((1, S, D), lambda b: (b, 0, 0))

    q_h, kt_h, v_h = pl.pallas_call(
        functools.partial(_qkv_proj_kernel, nhead=nhead),
        out_shape=(jax.ShapeDtypeStruct((B, H, S, dh), jnp.bfloat16),
                   jax.ShapeDtypeStruct((B, H, dh, S), jnp.bfloat16),
                   jax.ShapeDtypeStruct((B, H, S, dh), jnp.bfloat16)),
        grid_spec=pltpu.PrefetchScalarGridSpec(
            num_scalar_prefetch=0,
            grid=(B,),
            in_specs=[seq1, seq1] + [wspec1(w) for w in proj_weights],
            out_specs=[pl.BlockSpec((1, H, S, dh), lambda b: (b, 0, 0, 0)),
                       pl.BlockSpec((1, H, dh, S), lambda b: (b, 0, 0, 0)),
                       pl.BlockSpec((1, H, S, dh), lambda b: (b, 0, 0, 0))]),
        compiler_params=pltpu.CompilerParams(
            dimension_semantics=("parallel",),
            vmem_limit_bytes=_vmem_limit_bytes(_proj_bytes(S, D), vmem_cap)),
        cost_estimate=pl.CostEstimate(
            flops=int(B * 6 * S * D * D),
            transcendentals=0,
            bytes_accessed=int(2 * B * S * D * 4 + 3 * B * S * D * 2
                               + 3 * D * D * 2 + 3 * D * 4)),
    )(src, pos, *proj_weights)

    # ---------------- pass 2: attention + FFN over (batch, query-tile) ----------------
    weight_order = [params['wo'], params['bo'],
                    params['w1'], params['b1'],
                    params['w2'], params['b2'],
                    params['g1'], params['beta1'],
                    params['g2'], params['beta2']]

    est = _attn_fixed_bytes(S, D, FF) + _attn_tile_bytes(TS, S, D, FF, H)

    out = pl.pallas_call(
        functools.partial(_attn_ffn_kernel, nhead=nhead),
        out_shape=jax.ShapeDtypeStruct((B, S, D), src.dtype),
        grid_spec=pltpu.PrefetchScalarGridSpec(
            num_scalar_prefetch=0,
            grid=(B, n_qt),
            in_specs=[pl.BlockSpec((1, TS, D), lambda b, qt: (b, qt, 0)),
                      pl.BlockSpec((1, H, TS, dh), lambda b, qt: (b, 0, qt, 0)),
                      pl.BlockSpec((1, H, dh, S), lambda b, qt: (b, 0, 0, 0)),
                      pl.BlockSpec((1, H, S, dh), lambda b, qt: (b, 0, 0, 0))]
                     + [wspec2(w) for w in weight_order],
            out_specs=pl.BlockSpec((1, TS, D), lambda b, qt: (b, qt, 0))),
        compiler_params=pltpu.CompilerParams(
            dimension_semantics=("parallel", "parallel"),
            vmem_limit_bytes=_vmem_limit_bytes(est, vmem_cap)),
        cost_estimate=pl.CostEstimate(
            flops=int(B * (2 * S * D * D + 4 * S * S * D + 4 * S * D * FF)),
            transcendentals=int(B * (H * S * S + 4 * S)),
            bytes_accessed=int(B * S * D * 4           # src read
                               + B * S * D * 4         # output write
                               + 3 * B * S * D * 2     # Q / K^T / V caches
                               + (D * D + 2 * D * FF) * 2 + (6 * D + FF) * 4)),
    )(src, q_h, kt_h, v_h, *weight_order)
    return out


def transformer_encoder_layer(src, pos, params, *, nhead):
    """src, pos: (B, S, D) f32. params: kernel-layout params from prepare_params()."""
    try:
        return _build_forward(src, pos, params, nhead, single_buffer_weights=True)
    except Exception:
        # Fallback for JAX versions without BlockSpec(pipeline_mode=pl.Buffered(1)).
        return _build_forward(src, pos, params, nhead, single_buffer_weights=False)


# --------------------------------------------------------------------------------------
# Parameters (PyTorch-native layout) + host-side layout plumbing.
# --------------------------------------------------------------------------------------
def init_torch_layout_params(key, d_model, nhead, dim_feedforward):
    """Deterministic synthetic parameters in the PyTorch module's native shapes (f32)."""
    ks = jax.random.split(key, 8)
    s = 0.02
    return {
        'in_proj_w':  jax.random.normal(ks[0], (3 * d_model, d_model), jnp.float32) * s,
        'in_proj_b':  jax.random.normal(ks[1], (3 * d_model,), jnp.float32) * s,
        'out_proj_w': jax.random.normal(ks[2], (d_model, d_model), jnp.float32) * s,
        'out_proj_b': jax.random.normal(ks[3], (d_model,), jnp.float32) * s,
        'lin1_w':     jax.random.normal(ks[4], (dim_feedforward, d_model), jnp.float32) * s,
        'lin1_b':     jax.random.normal(ks[5], (dim_feedforward,), jnp.float32) * s,
        'lin2_w':     jax.random.normal(ks[6], (d_model, dim_feedforward), jnp.float32) * s,
        'lin2_b':     jax.random.normal(ks[7], (d_model,), jnp.float32) * s,
        'norm1_g':    jnp.ones((d_model,), jnp.float32),
        'norm1_b':    jnp.zeros((d_model,), jnp.float32),
        'norm2_g':    jnp.ones((d_model,), jnp.float32),
        'norm2_b':    jnp.zeros((d_model,), jnp.float32),
    }


def prepare_params(tp, d_model):
    """Pre-transpose matmul weights to input-major (K rows, N on lanes), cast to bf16,
    fuse W_q / W_k into a single (D, 2D) weight; biases / LN params stay f32 (1, N)."""
    D = d_model
    w_in, b_in = tp['in_proj_w'], tp['in_proj_b']
    row = lambda v: jnp.asarray(v).reshape(1, -1).astype(jnp.float32)
    tw = lambda w: jnp.asarray(w).T.astype(jnp.bfloat16)
    wq_t = jnp.asarray(w_in[0:D]).T
    wk_t = jnp.asarray(w_in[D:2 * D]).T
    return {
        'wqk': jnp.concatenate([wq_t, wk_t], axis=1).astype(jnp.bfloat16),      # (D, 2D)
        'bqk': row(jnp.concatenate([b_in[0:D], b_in[D:2 * D]])),                # (1, 2D)
        'wv': tw(w_in[2 * D:3 * D]), 'bv': row(b_in[2 * D:3 * D]),
        'wo': tw(tp['out_proj_w']), 'bo': row(tp['out_proj_b']),
        'w1': tw(tp['lin1_w']), 'b1': row(tp['lin1_b']),
        'w2': tw(tp['lin2_w']), 'b2': row(tp['lin2_b']),
        'g1': row(tp['norm1_g']), 'beta1': row(tp['norm1_b']),
        'g2': row(tp['norm2_g']), 'beta2': row(tp['norm2_b']),
    }


def reference_forward(src, pos, tp, nhead):
    """Pure-JAX f32 reference mirroring the PyTorch forward (eval mode)."""
    B, S, D = src.shape
    H = nhead
    dh = D // H
    eps = 1e-5

    w_in, b_in = tp['in_proj_w'], tp['in_proj_b']
    qk = src + pos
    q = qk @ w_in[0:D].T + b_in[0:D]
    k = qk @ w_in[D:2 * D].T + b_in[D:2 * D]
    v = src @ w_in[2 * D:3 * D].T + b_in[2 * D:3 * D]

    def heads(x):
        return x.reshape(B, S, H, dh).transpose(0, 2, 1, 3)     # (B, H, S, dh)

    qh = heads(q) / math.sqrt(dh)
    kh, vh = heads(k), heads(v)
    s = jnp.einsum('bhqd,bhkd->bhqk', qh, kh)
    p = jax.nn.softmax(s, axis=-1)
    a = jnp.einsum('bhqk,bhkd->bhqd', p, vh)
    a = a.transpose(0, 2, 1, 3).reshape(B, S, D)
    a = a @ tp['out_proj_w'].T + tp['out_proj_b']

    def layernorm(x, g, b):
        mu = x.mean(-1, keepdims=True)
        var = ((x - mu) ** 2).mean(-1, keepdims=True)
        return (x - mu) / jnp.sqrt(var + eps) * g + b

    x = layernorm(src + a, tp['norm1_g'], tp['norm1_b'])
    h = x @ tp['lin1_w'].T + tp['lin1_b']
    h = jnp.where(h >= 0, h, 0.01 * h)
    ff = h @ tp['lin2_w'].T + tp['lin2_b']
    return layernorm(x + ff, tp['norm2_g'], tp['norm2_b'])


if __name__ == "__main__":
    B, S, d_model, nhead, dim_ff = 2, 8, 32, 4, 64

    key = jax.random.PRNGKey(0)
    k_src, k_pos, k_par = jax.random.split(key, 3)
    src = jax.random.normal(k_src, (B, S, d_model), jnp.float32)
    pos = jax.random.normal(k_pos, (B, S, d_model), jnp.float32)

    torch_params = init_torch_layout_params(k_par, d_model, nhead, dim_ff)
    params = prepare_params(torch_params, d_model)

    out = transformer_encoder_layer(src, pos, params, nhead=nhead)
    jax.block_until_ready(out)

    assert out.shape == (B, S, d_model)
    assert bool(jnp.all(jnp.isfinite(out)))

    ref = reference_forward(src, pos, torch_params, nhead)
    max_err = float(jnp.max(jnp.abs(out - ref)))
    assert max_err < 5e-2, f"max abs error vs reference: {max_err}"

    print("KERNEL_OK")
</pallas_src>

<mosaic_0001>
module attributes {stable_mosaic.version = 11 : i64} {
  func.func @_qkv_proj_kernel(%arg0: i32, %arg1: memref<1x8x32xf32, #tpu.memory_space<vmem>>, %arg2: memref<1x8x32xf32, #tpu.memory_space<vmem>>, %arg3: memref<32x64xbf16, #tpu.memory_space<vmem>>, %arg4: memref<1x64xf32, #tpu.memory_space<vmem>>, %arg5: memref<32x32xbf16, #tpu.memory_space<vmem>>, %arg6: memref<1x32xf32, #tpu.memory_space<vmem>>, %arg7: memref<1x4x8x8xbf16, #tpu.memory_space<vmem>>, %arg8: memref<1x4x8x8xbf16, #tpu.memory_space<vmem>>, %arg9: memref<1x4x8x8xbf16, #tpu.memory_space<vmem>>) attributes {dimension_semantics = [#tpu.dimension_semantics<parallel>], iteration_bounds = array<i64: 2>, scalar_prefetch = 0 : i64, scratch_operands = 0 : i64, tpu.core_type = #tpu.core_type<tc>, window_params = [{transform_indices = @transform_0, window_bounds = array<i64: 1, 8, 32>}, {transform_indices = @transform_1, window_bounds = array<i64: 1, 8, 32>}, {pipeline_mode = #tpu.pipeline_mode<synchronous>, transform_indices = @transform_2, window_bounds = array<i64: 32, 64>}, {pipeline_mode = #tpu.pipeline_mode<synchronous>, transform_indices = @transform_3, window_bounds = array<i64: 1, 64>}, {pipeline_mode = #tpu.pipeline_mode<synchronous>, transform_indices = @transform_4, window_bounds = array<i64: 32, 32>}, {pipeline_mode = #tpu.pipeline_mode<synchronous>, transform_indices = @transform_5, window_bounds = array<i64: 1, 32>}, {transform_indices = @transform_6, window_bounds = array<i64: 1, 4, 8, 8>}, {transform_indices = @transform_7, window_bounds = array<i64: 1, 4, 8, 8>}, {transform_indices = @transform_8, window_bounds = array<i64: 1, 4, 8, 8>}]} {
    %c0 = arith.constant 0 : index
    %c0_0 = arith.constant 0 : index
    %c0_1 = arith.constant 0 : index
    %0 = vector.load %arg1[%c0, %c0_0, %c0_1] : memref<1x8x32xf32, #tpu.memory_space<vmem>>, vector<1x8x32xf32>
    %1 = vector.shape_cast %0 : vector<1x8x32xf32> to vector<8x32xf32>
    %c0_2 = arith.constant 0 : index
    %c0_3 = arith.constant 0 : index
    %c0_4 = arith.constant 0 : index
    %2 = vector.load %arg2[%c0_2, %c0_3, %c0_4] : memref<1x8x32xf32, #tpu.memory_space<vmem>>, vector<1x8x32xf32>
    %3 = vector.shape_cast %2 : vector<1x8x32xf32> to vector<8x32xf32>
    %4 = arith.addf %1, %3 : vector<8x32xf32>
    %5 = arith.truncf %4 : vector<8x32xf32> to vector<8x32xbf16>
    %c0_5 = arith.constant 0 : index
    %c0_6 = arith.constant 0 : index
    %6 = vector.load %arg3[%c0_5, %c0_6] : memref<32x64xbf16, #tpu.memory_space<vmem>>, vector<32x64xbf16>
    %cst = arith.constant dense<0.000000e+00> : vector<8x64xf32>
    %7 = tpu.matmul %5, %6, %cst {dimension_numbers = #tpu.dot_dimension_numbers<[1], [0], [0], [1], [0, 0, 1, 1], [], []>} : vector<8x32xbf16>, vector<32x64xbf16>, vector<8x64xf32> -> vector<8x64xf32>
    %c0_7 = arith.constant 0 : index
    %c0_8 = arith.constant 0 : index
    %8 = vector.load %arg4[%c0_7, %c0_8] : memref<1x64xf32, #tpu.memory_space<vmem>>, vector<1x64xf32>
    %9 = vector.broadcast %8 : vector<1x64xf32> to vector<8x64xf32>
    %10 = arith.addf %7, %9 : vector<8x64xf32>
    %11 = vector.extract_strided_slice %10 {offsets = [0, 0], sizes = [8, 32], strides = [1, 1]} : vector<8x64xf32> to vector<8x32xf32>
    %cst_9 = arith.constant 0.353553385 : f32
    %12 = vector.broadcast %cst_9 : f32 to vector<8x32xf32>
    %13 = arith.mulf %11, %12 : vector<8x32xf32>
    %14 = vector.extract_strided_slice %10 {offsets = [0, 32], sizes = [8, 32], strides = [1, 1]} : vector<8x64xf32> to vector<8x32xf32>
    %15 = arith.truncf %1 : vector<8x32xf32> to vector<8x32xbf16>
    %c0_10 = arith.constant 0 : index
    %c0_11 = arith.constant 0 : index
    %16 = vector.load %arg5[%c0_10, %c0_11] : memref<32x32xbf16, #tpu.memory_space<vmem>>, vector<32x32xbf16>
    %cst_12 = arith.constant dense<0.000000e+00> : vector<8x32xf32>
    %17 = tpu.matmul %15, %16, %cst_12 {dimension_numbers = #tpu.dot_dimension_numbers<[1], [0], [0], [1], [0, 0, 1, 1], [], []>} : vector<8x32xbf16>, vector<32x32xbf16>, vector<8x32xf32> -> vector<8x32xf32>
    %c0_13 = arith.constant 0 : index
    %c0_14 = arith.constant 0 : index
    %18 = vector.load %arg6[%c0_13, %c0_14] : memref<1x32xf32, #tpu.memory_space<vmem>>, vector<1x32xf32>
    %19 = vector.broadcast %18 : vector<1x32xf32> to vector<8x32xf32>
    %20 = arith.addf %17, %19 : vector<8x32xf32>
    %21 = vector.shape_cast %13 : vector<8x32xf32> to vector<8x4x8xf32>
    %22 = tpu.transpose %21, [1, 0, 2] : vector<8x4x8xf32> -> vector<4x8x8xf32>
    %23 = arith.truncf %22 : vector<4x8x8xf32> to vector<4x8x8xbf16>
    %c0_15 = arith.constant 0 : index
    %c0_16 = arith.constant 0 : index
    %c0_17 = arith.constant 0 : index
    %c0_18 = arith.constant 0 : index
    %24 = vector.load %arg7[%c0_15, %c0_16, %c0_17, %c0_18] : memref<1x4x8x8xbf16, #tpu.memory_space<vmem>>, vector<1x4x8x8xbf16>
    %25 = vector.shape_cast %24 : vector<1x4x8x8xbf16> to vector<4x8x8xbf16>
    %26 = vector.shape_cast %23 : vector<4x8x8xbf16> to vector<1x4x8x8xbf16>
    tpu.vector_store %arg7[%c0_15, %c0_16, %c0_17, %c0_18], %26 {strides = array<i32>} : memref<1x4x8x8xbf16, #tpu.memory_space<vmem>>, vector<1x4x8x8xbf16>,
    %27 = vector.shape_cast %14 : vector<8x32xf32> to vector<8x4x8xf32>
    %28 = tpu.transpose %27, [1, 2, 0] : vector<8x4x8xf32> -> vector<4x8x8xf32>
    %29 = arith.truncf %28 : vector<4x8x8xf32> to vector<4x8x8xbf16>
    %c0_19 = arith.constant 0 : index
    %c0_20 = arith.constant 0 : index
    %c0_21 = arith.constant 0 : index
    %c0_22 = arith.constant 0 : index
    %30 = vector.load %arg8[%c0_19, %c0_20, %c0_21, %c0_22] : memref<1x4x8x8xbf16, #tpu.memory_space<vmem>>, vector<1x4x8x8xbf16>
    %31 = vector.shape_cast %30 : vector<1x4x8x8xbf16> to vector<4x8x8xbf16>
    %32 = vector.shape_cast %29 : vector<4x8x8xbf16> to vector<1x4x8x8xbf16>
    tpu.vector_store %arg8[%c0_19, %c0_20, %c0_21, %c0_22], %32 {strides = array<i32>} : memref<1x4x8x8xbf16, #tpu.memory_space<vmem>>, vector<1x4x8x8xbf16>,
    %33 = vector.shape_cast %20 : vector<8x32xf32> to vector<8x4x8xf32>
    %34 = tpu.transpose %33, [1, 0, 2] : vector<8x4x8xf32> -> vector<4x8x8xf32>
    %35 = arith.truncf %34 : vector<4x8x8xf32> to vector<4x8x8xbf16>
    %c0_23 = arith.constant 0 : index
    %c0_24 = arith.constant 0 : index
    %c0_25 = arith.constant 0 : index
    %c0_26 = arith.constant 0 : index
    %36 = vector.load %arg9[%c0_23, %c0_24, %c0_25, %c0_26] : memref<1x4x8x8xbf16, #tpu.memory_space<vmem>>, vector<1x4x8x8xbf16>
    %37 = vector.shape_cast %36 : vector<1x4x8x8xbf16> to vector<4x8x8xbf16>
    %38 = vector.shape_cast %35 : vector<4x8x8xbf16> to vector<1x4x8x8xbf16>
    tpu.vector_store %arg9[%c0_23, %c0_24, %c0_25, %c0_26], %38 {strides = array<i32>} : memref<1x4x8x8xbf16, #tpu.memory_space<vmem>>, vector<1x4x8x8xbf16>,
    return
  }
  func.func @transform_0(%arg0: i32) -> (i32, i32, i32) {
    %c0_i32 = arith.constant 0 : i32
    %c0_i32_0 = arith.constant 0 : i32
    %c0_i32_1 = arith.constant 0 : i32
    return %arg0, %c0_i32, %c0_i32_0 : i32, i32, i32
  }
  func.func @transform_1(%arg0: i32) -> (i32, i32, i32) {
    %c0_i32 = arith.constant 0 : i32
    %c0_i32_0 = arith.constant 0 : i32
    %c0_i32_1 = arith.constant 0 : i32
    return %arg0, %c0_i32, %c0_i32_0 : i32, i32, i32
  }
  func.func @transform_2(%arg0: i32) -> (i32, i32) {
    %c0_i32 = arith.constant 0 : i32
    %c0_i32_0 = arith.constant 0 : i32
    %c0_i32_1 = arith.constant 0 : i32
    return %c0_i32, %c0_i32_0 : i32, i32
  }
  func.func @transform_3(%arg0: i32) -> (i32, i32) {
    %c0_i32 = arith.constant 0 : i32
    %c0_i32_0 = arith.constant 0 : i32
    %c0_i32_1 = arith.constant 0 : i32
    return %c0_i32, %c0_i32_0 : i32, i32
  }
  func.func @transform_4(%arg0: i32) -> (i32, i32) {
    %c0_i32 = arith.constant 0 : i32
    %c0_i32_0 = arith.constant 0 : i32
    %c0_i32_1 = arith.constant 0 : i32
    return %c0_i32, %c0_i32_0 : i32, i32
  }
  func.func @transform_5(%arg0: i32) -> (i32, i32) {
    %c0_i32 = arith.constant 0 : i32
    %c0_i32_0 = arith.constant 0 : i32
    %c0_i32_1 = arith.constant 0 : i32
    return %c0_i32, %c0_i32_0 : i32, i32
  }
  func.func @transform_6(%arg0: i32) -> (i32, i32, i32, i32) {
    %c0_i32 = arith.constant 0 : i32
    %c0_i32_0 = arith.constant 0 : i32
    %c0_i32_1 = arith.constant 0 : i32
    %c0_i32_2 = arith.constant 0 : i32
    return %arg0, %c0_i32, %c0_i32_0, %c0_i32_1 : i32, i32, i32, i32
  }
  func.func @transform_7(%arg0: i32) -> (i32, i32, i32, i32) {
    %c0_i32 = arith.constant 0 : i32
    %c0_i32_0 = arith.constant 0 : i32
    %c0_i32_1 = arith.constant 0 : i32
    %c0_i32_2 = arith.constant 0 : i32
    return %arg0, %c0_i32, %c0_i32_0, %c0_i32_1 : i32, i32, i32, i32
  }
  func.func @transform_8(%arg0: i32) -> (i32, i32, i32, i32) {
    %c0_i32 = arith.constant 0 : i32
    %c0_i32_0 = arith.constant 0 : i32
    %c0_i32_1 = arith.constant 0 : i32
    %c0_i32_2 = arith.constant 0 : i32
    return %arg0, %c0_i32, %c0_i32_0, %c0_i32_1 : i32, i32, i32, i32
  }
}

module attributes {stable_mosaic.version = 11 : i64} {
  func.func @_qkv_proj_kernel(%arg0: i32, %arg1: memref<1x8x32xf32, #tpu.memory_space<vmem>>, %arg2: memref<1x8x32xf32, #tpu.memory_space<vmem>>, %arg3: memref<32x64xbf16, #tpu.memory_space<vmem>>, %arg4: memref<1x64xf32, #tpu.memory_space<vmem>>, %arg5: memref<32x32xbf16, #tpu.memory_space<vmem>>, %arg6: memref<1x32xf32, #tpu.memory_space<vmem>>, %arg7: memref<1x4x8x8xbf16, #tpu.memory_space<vmem>>, %arg8: memref<1x4x8x8xbf16, #tpu.memory_space<vmem>>, %arg9: memref<1x4x8x8xbf16, #tpu.memory_space<vmem>>) attributes {dimension_semantics = [#tpu.dimension_semantics<parallel>], iteration_bounds = array<i64: 2>, scalar_prefetch = 0 : i64, scratch_operands = 0 : i64, tpu.core_type = #tpu.core_type<tc>, window_params = [{transform_indices = @transform_0, window_bounds = array<i64: 1, 8, 32>}, {transform_indices = @transform_1, window_bounds = array<i64: 1, 8, 32>}, {pipeline_mode = #tpu.pipeline_mode<synchronous>, transform_indices = @transform_2, window_bounds = array<i64: 32, 64>}, {pipeline_mode = #tpu.pipeline_mode<synchronous>, transform_indices = @transform_3, window_bounds = array<i64: 1, 64>}, {pipeline_mode = #tpu.pipeline_mode<synchronous>, transform_indices = @transform_4, window_bounds = array<i64: 32, 32>}, {pipeline_mode = #tpu.pipeline_mode<synchronous>, transform_indices = @transform_5, window_bounds = array<i64: 1, 32>}, {transform_indices = @transform_6, window_bounds = array<i64: 1, 4, 8, 8>}, {transform_indices = @transform_7, window_bounds = array<i64: 1, 4, 8, 8>}, {transform_indices = @transform_8, window_bounds = array<i64: 1, 4, 8, 8>}]} {
    %c0 = arith.constant 0 : index
    %c0_0 = arith.constant 0 : index
    %c0_1 = arith.constant 0 : index
    %0 = vector.load %arg1[%c0, %c0_0, %c0_1] : memref<1x8x32xf32, #tpu.memory_space<vmem>>, vector<1x8x32xf32>
    %1 = vector.shape_cast %0 : vector<1x8x32xf32> to vector<8x32xf32>
    %c0_2 = arith.constant 0 : index
    %c0_3 = arith.constant 0 : index
    %c0_4 = arith.constant 0 : index
    %2 = vector.load %arg2[%c0_2, %c0_3, %c0_4] : memref<1x8x32xf32, #tpu.memory_space<vmem>>, vector<1x8x32xf32>
    %3 = vector.shape_cast %2 : vector<1x8x32xf32> to vector<8x32xf32>
    %4 = arith.addf %1, %3 : vector<8x32xf32>
    %5 = arith.truncf %4 : vector<8x32xf32> to vector<8x32xbf16>
    %c0_5 = arith.constant 0 : index
    %c0_6 = arith.constant 0 : index
    %6 = vector.load %arg3[%c0_5, %c0_6] : memref<32x64xbf16, #tpu.memory_space<vmem>>, vector<32x64xbf16>
    %cst = arith.constant dense<0.000000e+00> : vector<8x64xf32>
    %7 = tpu.matmul %5, %6, %cst {dimension_numbers = #tpu.dot_dimension_numbers<[1], [0], [0], [1], [0, 0, 1, 1], [], []>} : vector<8x32xbf16>, vector<32x64xbf16>, vector<8x64xf32> -> vector<8x64xf32>
    %c0_7 = arith.constant 0 : index
    %c0_8 = arith.constant 0 : index
    %8 = vector.load %arg4[%c0_7, %c0_8] : memref<1x64xf32, #tpu.memory_space<vmem>>, vector<1x64xf32>
    %9 = vector.broadcast %8 : vector<1x64xf32> to vector<8x64xf32>
    %10 = arith.addf %7, %9 : vector<8x64xf32>
    %11 = vector.extract_strided_slice %10 {offsets = [0, 0], sizes = [8, 32], strides = [1, 1]} : vector<8x64xf32> to vector<8x32xf32>
    %cst_9 = arith.constant 0.353553385 : f32
    %12 = vector.broadcast %cst_9 : f32 to vector<8x32xf32>
    %13 = arith.mulf %11, %12 : vector<8x32xf32>
    %14 = vector.extract_strided_slice %10 {offsets = [0, 32], sizes = [8, 32], strides = [1, 1]} : vector<8x64xf32> to vector<8x32xf32>
    %15 = arith.truncf %1 : vector<8x32xf32> to vector<8x32xbf16>
    %c0_10 = arith.constant 0 : index
    %c0_11 = arith.constant 0 : index
    %16 = vector.load %arg5[%c0_10, %c0_11] : memref<32x32xbf16, #tpu.memory_space<vmem>>, vector<32x32xbf16>
    %cst_12 = arith.constant dense<0.000000e+00> : vector<8x32xf32>
    %17 = tpu.matmul %15, %16, %cst_12 {dimension_numbers = #tpu.dot_dimension_numbers<[1], [0], [0], [1], [0, 0, 1, 1], [], []>} : vector<8x32xbf16>, vector<32x32xbf16>, vector<8x32xf32> -> vector<8x32xf32>
    %c0_13 = arith.constant 0 : index
    %c0_14 = arith.constant 0 : index
    %18 = vector.load %arg6[%c0_13, %c0_14] : memref<1x32xf32, #tpu.memory_space<vmem>>, vector<1x32xf32>
    %19 = vector.broadcast %18 : vector<1x32xf32> to vector<8x32xf32>
    %20 = arith.addf %17, %19 : vector<8x32xf32>
    %21 = vector.shape_cast %13 : vector<8x32xf32> to vector<8x4x8xf32>
    %22 = tpu.transpose %21, [1, 0, 2] : vector<8x4x8xf32> -> vector<4x8x8xf32>
    %23 = arith.truncf %22 : vector<4x8x8xf32> to vector<4x8x8xbf16>
    %c0_15 = arith.constant 0 : index
    %c0_16 = arith.constant 0 : index
    %c0_17 = arith.constant 0 : index
    %c0_18 = arith.constant 0 : index
    %24 = vector.load %arg7[%c0_15, %c0_16, %c0_17, %c0_18] : memref<1x4x8x8xbf16, #tpu.memory_space<vmem>>, vector<1x4x8x8xbf16>
    %25 = vector.shape_cast %24 : vector<1x4x8x8xbf16> to vector<4x8x8xbf16>
    %26 = vector.shape_cast %23 : vector<4x8x8xbf16> to vector<1x4x8x8xbf16>
    tpu.vector_store %arg7[%c0_15, %c0_16, %c0_17, %c0_18], %26 {strides = array<i32>} : memref<1x4x8x8xbf16, #tpu.memory_space<vmem>>, vector<1x4x8x8xbf16>,
    %27 = vector.shape_cast %14 : vector<8x32xf32> to vector<8x4x8xf32>
    %28 = tpu.transpose %27, [1, 2, 0] : vector<8x4x8xf32> -> vector<4x8x8xf32>
    %29 = arith.truncf %28 : vector<4x8x8xf32> to vector<4x8x8xbf16>
    %c0_19 = arith.constant 0 : index
    %c0_20 = arith.constant 0 : index
    %c0_21 = arith.constant 0 : index
    %c0_22 = arith.constant 0 : index
    %30 = vector.load %arg8[%c0_19, %c0_20, %c0_21, %c0_22] : memref<1x4x8x8xbf16, #tpu.memory_space<vmem>>, vector<1x4x8x8xbf16>
    %31 = vector.shape_cast %30 : vector<1x4x8x8xbf16> to vector<4x8x8xbf16>
    %32 = vector.shape_cast %29 : vector<4x8x8xbf16> to vector<1x4x8x8xbf16>
    tpu.vector_store %arg8[%c0_19, %c0_20, %c0_21, %c0_22], %32 {strides = array<i32>} : memref<1x4x8x8xbf16, #tpu.memory_space<vmem>>, vector<1x4x8x8xbf16>,
    %33 = vector.shape_cast %20 : vector<8x32xf32> to vector<8x4x8xf32>
    %34 = tpu.transpose %33, [1, 0, 2] : vector<8x4x8xf32> -> vector<4x8x8xf32>
    %35 = arith.truncf %34 : vector<4x8x8xf32> to vector<4x8x8xbf16>
    %c0_23 = arith.constant 0 : index
    %c0_24 = arith.constant 0 : index
    %c0_25 = arith.constant 0 : index
    %c0_26 = arith.constant 0 : index
    %36 = vector.load %arg9[%c0_23, %c0_24, %c0_25, %c0_26] : memref<1x4x8x8xbf16, #tpu.memory_space<vmem>>, vector<1x4x8x8xbf16>
    %37 = vector.shape_cast %36 : vector<1x4x8x8xbf16> to vector<4x8x8xbf16>
    %38 = vector.shape_cast %35 : vector<4x8x8xbf16> to vector<1x4x8x8xbf16>
    tpu.vector_store %arg9[%c0_23, %c0_24, %c0_25, %c0_26], %38 {strides = array<i32>} : memref<1x4x8x8xbf16, #tpu.memory_space<vmem>>, vector<1x4x8x8xbf16>,
    return
  }
  func.func @transform_0(%arg0: i32) -> (i32, i32, i32) {
    %c0_i32 = arith.constant 0 : i32
    %c0_i32_0 = arith.constant 0 : i32
    %c0_i32_1 = arith.constant 0 : i32
    return %arg0, %c0_i32, %c0_i32_0 : i32, i32, i32
  }
  func.func @transform_1(%arg0: i32) -> (i32, i32, i32) {
    %c0_i32 = arith.constant 0 : i32
    %c0_i32_0 = arith.constant 0 : i32
    %c0_i32_1 = arith.constant 0 : i32
    return %arg0, %c0_i32, %c0_i32_0 : i32, i32, i32
  }
  func.func @transform_2(%arg0: i32) -> (i32, i32) {
    %c0_i32 = arith.constant 0 : i32
    %c0_i32_0 = arith.constant 0 : i32
    %c0_i32_1 = arith.constant 0 : i32
    return %c0_i32, %c0_i32_0 : i32, i32
  }
  func.func @transform_3(%arg0: i32) -> (i32, i32) {
    %c0_i32 = arith.constant 0 : i32
    %c0_i32_0 = arith.constant 0 : i32
    %c0_i32_1 = arith.constant 0 : i32
    return %c0_i32, %c0_i32_0 : i32, i32
  }
  func.func @transform_4(%arg0: i32) -> (i32, i32) {
    %c0_i32 = arith.constant 0 : i32
    %c0_i32_0 = arith.constant 0 : i32
    %c0_i32_1 = arith.constant 0 : i32
    return %c0_i32, %c0_i32_0 : i32, i32
  }
  func.func @transform_5(%arg0: i32) -> (i32, i32) {
    %c0_i32 = arith.constant 0 : i32
    %c0_i32_0 = arith.constant 0 : i32
    %c0_i32_1 = arith.constant 0 : i32
    return %c0_i32, %c0_i32_0 : i32, i32
  }
  func.func @transform_6(%arg0: i32) -> (i32, i32, i32, i32) {
    %c0_i32 = arith.constant 0 : i32
    %c0_i32_0 = arith.constant 0 : i32
    %c0_i32_1 = arith.constant 0 : i32
    %c0_i32_2 = arith.constant 0 : i32
    return %arg0, %c0_i32, %c0_i32_0, %c0_i32_1 : i32, i32, i32, i32
  }
  func.func @transform_7(%arg0: i32) -> (i32, i32, i32, i32) {
    %c0_i32 = arith.constant 0 : i32
    %c0_i32_0 = arith.constant 0 : i32
    %c0_i32_1 = arith.constant 0 : i32
    %c0_i32_2 = arith.constant 0 : i32
    return %arg0, %c0_i32, %c0_i32_0, %c0_i32_1 : i32, i32, i32, i32
  }
  func.func @transform_8(%arg0: i32) -> (i32, i32, i32, i32) {
    %c0_i32 = arith.constant 0 : i32
    %c0_i32_0 = arith.constant 0 : i32
    %c0_i32_1 = arith.constant 0 : i32
    %c0_i32_2 = arith.constant 0 : i32
    return %arg0, %c0_i32, %c0_i32_0, %c0_i32_1 : i32, i32, i32, i32
  }
}

</mosaic_0001>

<bundles_post_ra>
// kernel: tpu_custom_call.1
= control target key start
LH: loop header
LB: loop body
LE: loop exit
PB: predicated region body
PF: predicated region fallthrough
CT: control target
= control target key end

     0   :  { %s2813_s0 = inlined_call_operand.hbm [shape: f32[2,8,32], index: 0, kind: input, shape index: {}]   ;;  %s2814_s1 = inlined_call_operand.hbm [shape: f32[2,8,32], index: 1, kind: input, shape index: {}]   ;;  %s2815_s2 = inlined_call_operand.hbm [shape: bf16[32,64], index: 2, kind: input, shape index: {}]   ;;  %s2816_s3 = inlined_call_operand.vmem [shape: f32[1,64], index: 3, kind: input, shape index: {}]   ;;  %s2817_s4 = inlined_call_operand.hbm [shape: bf16[32,32], index: 4, kind: input, shape index: {}]   ;;  %s2818_s5 = inlined_call_operand.vmem [shape: f32[1,32], index: 5, kind: input, shape index: {}]   ;;  %s2819_s6 = inlined_call_operand.hbm [shape: bf16[2,4,8,8], index: 6, kind: output, shape index: {0}]   ;;  %s2820_s7 = inlined_call_operand.hbm [shape: bf16[2,4,8,8], index: 7, kind: output, shape index: {1}]   ;;  %s2821_s8 = inlined_call_operand.hbm [shape: bf16[2,4,8,8], index: 8, kind: output, shape index: {2}]  }
   0x1   :  { %2830 = sst [smem:[#allocation23_spill]] %s2815_s2 }
   0x2   :  { %2831 = sst [smem:[#allocation24_spill]] %s2817_s4 }
   0x3   :  { %14 = vsyncpa [#allocation3], 0 }
   0x4   :  { %16 = vsyncpa [#allocation3 + $0x1], 0 }
   0x5   :  { %17 = vsyncpa [#allocation6], 0 }
   0x6   :  { %19 = vsyncpa [#allocation6 + $0x1], 0 }
   0x7   :  { %20 = vsyncpa [#allocation9], 0 }
   0x8   :  { %21 = vsyncpa [#allocation4], 0 }
   0x9   :  { %23 = vsyncpa [#allocation4 + $0x1], 0 }
   0xa   :  { %24 = vsyncpa [#allocation12], 0 }
   0xb   :  { %26 = vsyncpa [#allocation12 + $0x1], 0  ;;  %s2366_s27 = smov 0   ;;  %s2368_s28 = smov 0  }
   0xc   :  { %s2370_s29 = smov 0   ;;  %s2372_s30 = smov 0  }
   0xd LB: > { %2832 = sst [smem:[#allocation20_spill]] %s2296_s29  ;;  %s2387_s9 = sadd.s32 4294967295, %s2300_s30   ;;  %s2300_s30 = sphi %s2372_s30, %s2854_s30   ;;  %s2296_s29 = sphi %s2370_s29, %s2856_s29   ;;  %s2292_s28 = sphi %s2368_s28, %s2858_s28   ;;  %s2288_s27 = sphi %s2366_s27, %s2857_s27  }
   0xe   : > { %s2823_s10 = sadd.s32 4294967294, %s2300_s30   ;;  %p52_p0 = scmp.ne.s32.totalorder %s2292_s28, %s2288_s27 }
   0xf   : > { %p2822_p1 = scmp.eq.s32.totalorder %s2387_s9, 0  ;;  %p192_p3 = scmp.eq.s32.totalorder %s2823_s10, 1 }
  0x10   : > { %p1898_p5 = scmp.ge.s32.totalorder %s2300_s30, 1  ;;  %p251_p7 = scmp.lt.s32.totalorder %s2300_s30, 3 }
  0x11   : > { %p2398_p4 = por %p2822_p1, %p52_p0  ;;  %p2403_p6 = por %p192_p3, %p52_p0 }
  0x12   : > { %p2408_p8 = pnand %p1898_p5, %p251_p7  ;;  %s2302_s14 = smov [#allocation7]  }
  0x13   : > { %s2833_s11 = scalar_select %p2398_p4, 1, 0 }
  0x14   : > { %s2834_s12 = scalar_select %p2403_p6, 1, 0 }
  0x15   : > { %s2835_s13 = scalar_select %p2408_p8, 1, 0 }
  0x16   : > { %s263_s15 = sshll.u32 %s2302_s14, 4  ;;  %p1980_p9 = pneg %p2408_p8  ;;  %s264_s15 = int_to_ptr.vmem [resolvable:$true] %s263_s15 }
  0x17   : > { %s2303_s17 = smov [#allocation8]   ;;  %s2071_s19 = scalar_lea.vmem %s264_s15, 256 }
  0x18   : > { %p2417_p11 = pnand %p1980_p9, %p2822_p1  ;;  %s279_s18 = sshll.u32 %s2303_s17, 4  ;;  %s280_s18 = int_to_ptr.vmem [resolvable:$true] %s279_s18 }
  0x19   : > { %p2072_p13 = scmp.ne.s32.totalorder %s264_s15, %s2071_s19  ;;  %p2079_p5 = scmp.lt.s32.totalorder %s264_s15, %s264_s15 }
  0x1a   : > { %p2062_p12 = pneg %p2417_p11  ;;  %p2080_p7 = scmp.lt.s32.totalorder %s2071_s19, %s2071_s19 }
  0x1c   : > { %p2074_p0 = pnand %p2072_p13, %p2062_p12  ;;  %p2081_p10 = por %p2080_p7, %p2079_p5 }
  0x1e   : > { %p2075_p3 = pneg %p2074_p0 }
  0x20   : > { %p2082_p9 = pnand %p2081_p10, %p2075_p3 }
  0x22   : > { %2085 = shalt.err (!%p2082_p9)
}
  0x23   : > { %s2304_s20 = smov 64   ;;  %s2305_s21 = smov 4  }
  0x24   : > { %s2837_s2 = sld [smem:[#allocation23_spill]]  ;;  %s2097_s24 = scalar_lea.vmem %s280_s18, 256 }
  0x25   : > { %p2098_p1 = scmp.ne.s32.totalorder %s280_s18, %s2097_s24  ;;  %p2105_p2 = scmp.lt.s32.totalorder %s280_s18, %s280_s18 }
  0x26   : > { %p2106_p6 = scmp.lt.s32.totalorder %s2097_s24, %s2097_s24 }
  0x27   : > { %p2100_p13 = pnand %p2098_p1, %p2062_p12 }
  0x28   : > { %p2107_p5 = por %p2106_p6, %p2105_p2 }
  0x29   : > { %p2101_p0 = pneg %p2100_p13 }
  0x2a   : > { %1983 = dma.hbm_to_vmem [thread:$0]  (!%p2417_p11), %s2837_s2, 256, %s264_s15, [#allocation6], %s2304_s20, %s2304_s20, %s2305_s21  }
  0x2b   : > { %p2108_p10 = pnand %p2107_p5, %p2101_p0 }
  0x2d   : > { %2111 = shalt.err (!%p2108_p10)
}
  0x2e   : > { %s2838_s4 = sld [smem:[#allocation24_spill]]  ;;  %s2440_s14 = sadd.s32 1, %s2300_s30  }
  0x2f   : > { %2839 = sst [smem:[#allocation21_spill]] %s2440_s14  ;;  %s39_s15 = sadd.s32 1, %s2296_s29 }
  0x30   : > { %s36_s16 = ssub.s32 %s2300_s30, %s2440_s14  ;;  %p46_p1 = scmp.ne.s32.totalorder %s2296_s29, %s2292_s28 }
  0x31   : > { %p37_p2 = scmp.eq.s32.totalorder %s36_s16, 0  ;;  %p47_p6 = scmp.eq.s32.totalorder %s2300_s30, 0 }
  0x32   : > { %p2840_p12 = scmp.eq.s32.totalorder %s2387_s9, 1  ;;  %p2006_p7 = scmp.lt.s32.totalorder %s2300_s30, 2 }
  0x33   : > { %s2456_s19 = scalar_select %p37_p2, %s2296_s29, %s39_s15  }
  0x34   : > { %1986 = dma.hbm_to_vmem [thread:$0]  (!%p2417_p11), %s2838_s4, 256, %s280_s18, [#allocation9], %s2304_s20, %s2304_s20, %s2305_s21  }
  0x35   : > { %p2450_p3 = por %p2840_p12, %p46_p1  ;;  %2842 = sst [smem:[#allocation22_spill]] %s2456_s19 }
  0x36   : > { %p48_p9 = por %p47_p6, %p46_p1  ;;  %s296_s22 = sand.u32 1, %s2296_s29  }
  0x37   : > { %s2841_s17 = scalar_select %p2450_p3, 1, 0 }
  0x38   : > { %s2459_s18 = sshll.u32 %s296_s22, 3  ;;  %s1903_s20 = sshll.u32 %s2300_s30, 7 }
  0x39   : > { %s2465_s24 = scalar_lea.hbm %s2813_s0, %s1903_s20  ;;  %s300_s25 = scalar_lea.vmem [#allocation2], %s2459_s18 }
  0x3a   : > { %s307_s26 = sshll.u32 %s300_s25, 4  ;;  %p2470_p11 = pnand %p2006_p7, %p48_p9  ;;  %s2468_s26 = int_to_ptr.vmem [resolvable:$true] %s307_s26 }
  0x3b   : > { %s2477_s2 = scalar_lea.hbm %s2814_s1, %s1903_s20  ;;  %s314_s21 = sand.u32 1, %s2300_s30  }
  0x3c   : > { %s297_s23 = scalar_lea.sflag [#allocation3], %s296_s22  ;;  %s2112_s4 = scalar_lea.hbm %s2465_s24, 128 }
  0x3d   : > { %p2113_p13 = scmp.ne.s32.totalorder %s2465_s24, %s2112_s4  ;;  %p2114_p0 = pneg %p2470_p11 }
  0x3e   : > { %s2117_s29 = scalar_lea.hbm %s2813_s0, 256  ;;  %p2118_p1 = scmp.lt.s32.totalorder %s2465_s24, %s2813_s0 }
  0x3f   : > { %p2115_p5 = pnand %p2114_p0, %p2113_p13  ;;  %p2119_p2 = scmp.lt.s32.totalorder %s2117_s29, %s2112_s4 }
  0x41   : > { %p2116_p10 = pneg %p2115_p5  ;;  %p2120_p6 = por %p2119_p2, %p2118_p1 }
  0x43   : > { %p2121_p12 = pnand %p2120_p6, %p2116_p10 }
  0x45   : > { %2124 = shalt.err (!%p2121_p12)
}
  0x46   : > { %s2125_s22 = scalar_lea.vmem %s2468_s26, 128  ;;  %s2306_s19 = smov [#allocation2]  }
  0x47   : > { %p2126_p7 = scmp.ne.s32.totalorder %s2468_s26, %s2125_s22  ;;  %s2130_s20 = sshll.u32 %s2306_s19, 4  ;;  %s2131_s20 = int_to_ptr.vmem [resolvable:$false] %s2130_s20 }
  0x48   : > { %s2132_s16 = scalar_lea.vmem %s2131_s20, 256  ;;  %p2133_p5 = scmp.lt.s32.totalorder %s2468_s26, %s2131_s20 }
  0x49   : > { %p2128_p9 = pnand %p2126_p7, %p2114_p0  ;;  %p2134_p3 = scmp.lt.s32.totalorder %s2132_s16, %s2125_s22 }
  0x4b   : > { %p2129_p13 = pneg %p2128_p9  ;;  %p2135_p4 = por %p2134_p3, %p2133_p5 }
  0x4d   : > { %p2136_p1 = pnand %p2135_p4, %p2129_p13 }
  0x4f   : > { %2139 = shalt.err (!%p2136_p1)
}
  0x50   : > { %1990 = dma.hbm_to_vmem [thread:$0]  (!%p2470_p11), %s2465_s24, 128, %s2468_s26, %s297_s23  }
  0x51   : > { %s318_s4 = scalar_lea.vmem [#allocation5], %s2459_s18  ;;  %s315_s14 = scalar_lea.sflag [#allocation6], %s314_s21 }
  0x52   : > { %s325_s29 = sshll.u32 %s318_s4, 4  ;;  %s2140_s25 = scalar_lea.hbm %s2477_s2, 128  ;;  %s326_s29 = int_to_ptr.vmem [resolvable:$true] %s325_s29 }
  0x53   : > { %p2141_p3 = scmp.ne.s32.totalorder %s2477_s2, %s2140_s25  ;;  %s2145_s19 = scalar_lea.hbm %s2814_s1, 256 }
  0x54   : > { %p2146_p2 = scmp.lt.s32.totalorder %s2477_s2, %s2814_s1  ;;  %p2147_p6 = scmp.lt.s32.totalorder %s2145_s19, %s2140_s25 }
  0x55   : > { %p2143_p4 = pnand %p2141_p3, %p2114_p0 }
  0x56   : > { %p2148_p12 = por %p2147_p6, %p2146_p2 }
  0x57   : > { %p2144_p10 = pneg %p2143_p4 }
  0x59   : > { %p2149_p7 = pnand %p2148_p12, %p2144_p10 }
  0x5b   : > { %2152 = shalt.err (!%p2149_p7)
}
  0x5c   : > { %s2153_s18 = scalar_lea.vmem %s326_s29, 128  ;;  %s2307_s24 = smov [#allocation5]  }
  0x5d   : > { %p2154_p9 = scmp.ne.s32.totalorder %s326_s29, %s2153_s18  ;;  %s2158_s26 = sshll.u32 %s2307_s24, 4  ;;  %s2159_s26 = int_to_ptr.vmem [resolvable:$false] %s2158_s26 }
  0x5e   : > { %s2160_s21 = scalar_lea.vmem %s2159_s26, 256  ;;  %p2161_p1 = scmp.lt.s32.totalorder %s326_s29, %s2159_s26 }
  0x5f   : > { %p2156_p13 = pnand %p2154_p9, %p2114_p0  ;;  %p2162_p3 = scmp.lt.s32.totalorder %s2160_s21, %s2153_s18 }
  0x61   : > { %p2157_p5 = pneg %p2156_p13  ;;  %p2163_p4 = por %p2162_p3, %p2161_p1 }
  0x63   : > { %p2164_p8 = pnand %p2163_p4, %p2157_p5 }
  0x65   : > { %2167 = shalt.err (!%p2164_p8)
}
  0x66   : > { %1993 = dma.hbm_to_vmem [thread:$0]  (!%p2470_p11), %s2477_s2, 128, %s326_s29, %s315_s14  }
  0x67   : > { %p2844_p10 = scmp.ne.s32.totalorder %s2835_s13, 0 }
  0x68   : > { %s2528_s23 = sand.u32 (!%p2844_p10), 1, %s2292_s28   ;;  %p2845_p0 = scmp.ne.s32.totalorder (!%p2844_p10), %s2833_s11, 0 }
  0x69   : > { %334 = sbr.rel (%p2844_p10) target bundleno = 906 (0x38a), region = 44  ;;  %s1907_s4 = sshll.u32 (!%p2844_p10), %s2528_s23, 3 }
  0x6a   : > { %s337_s25 = scalar_lea.sflag (!%p2844_p10), [#allocation3], %s2528_s23  ;;  %s340_s10 = scalar_lea.vmem (!%p2844_p10), [#allocation2], %s1907_s4 }
  0x6e   : > { %2263 = dma.done.wait (%p2845_p0), %s337_s25, 128  }
  0x6f   : > { %2265 = vsyncadd (%p2845_p0), %s337_s25, 4294967168  ;;  %s345_s2 = sand.u32 1, %s2387_s9   ;;  %s349_s15 = scalar_lea.vmem [#allocation5], %s1907_s4 }
  0x70   : > { %s346_s13 = scalar_lea.sflag [#allocation6], %s345_s2 }
  0x71   : > { %2267 = dma.done.wait (%p2845_p0), %s346_s13, 128  }
  0x72   : > { %2269 = vsyncadd (%p2845_p0), %s346_s13, 4294967168  ;;  %p2846_p8 = scmp.eq.s32.totalorder %s2387_s9, 0 }
  0x74   : > { %2271 = dma.done.wait (%p2846_p8), [#allocation6], 256   ;;  %p2847_p11 = pmov %p2846_p8 }
  0x75   : > { %p2848_p2 = pmov %p2846_p8 }
  0x76   : > { %2273 = vsyncadd (%p2847_p11), [#allocation6], 4294967040 }
  0x77   : > { %2275 = dma.done.wait (%p2848_p2), [#allocation9], 256   ;;  %p2849_p6 = pmov %p2848_p2 }
  0x78   : > { %v2308_v0 = vmov 0.0   ;;  %vm2309_vm0 = vmmov 0   ;;  %v2056_v1 = vld [vmem:[#allocation7 + $0x8] sm:$0xff]   ;;  %v2057_v2 = vld [vmem:[#allocation7] sm:$0xff]   ;;  %v407_v4 = vld [vmem:[%s349_s15] sm:$0xff]  ;;  %vm433_vm1 = vcmask 261120   ;;  %v560_v29 = vlaneseq }
  0x79   : > { %2277 = vsyncadd (%p2849_p6), [#allocation9], 4294967040  ;;  %1946 = vmatprep.subr.bf16.mxu0 %v2308_v0  ;;  %1950 = vmatprep.mubr.msk.bf16.mxu0 %vm2309_vm0, %v2308_v0  ;;  %v406_v3 = vld [vmem:[%s340_s10] sm:$0xff]  ;;  %v2058_v6 = vld [vmem:[#allocation8 + $0x8] sm:$0xff]   ;;  %s2310_s14 = smov 104   ;;  %s2311_s22 = smov 120  }
  0x7a   : > { %1954 = vmatprep.subr.bf16.mxu1 %v2308_v0  ;;  %1958 = vmatprep.mubr.msk.bf16.mxu1 %vm2309_vm0, %v2308_v0  ;;  %v408_v5 = vadd.f32 %v407_v4, %v406_v3  ;;  %v2059_v8 = vld [vmem:[#allocation8] sm:$0xff]   ;;  %v478_v9 = vpack.c.bf16 %v406_v3, %v406_v3  ;;  %v1914_v10 = vld [vmem:[%s2816_s3] ss:$0 sm:$0xff]  ;;  %s2312_s16 = smov 96   ;;  %s2313_s18 = smov 112   ;;  %v561_v34 = vshrl.u32 %v560_v29, 7 }
  0x7b   : > { %1947 = vmatpush3.bf16.msra.mxu0 %v2056_v1  ;;  %1955 = vmatpush3.bf16.msra.mxu1 %v2058_v6  ;;  %v1918_v16 = vld [vmem:[%s2818_s5] ss:$0 sm:$0xff]  ;;  %v2314_v27 = vmov 1983009808   ;;  %v2315_v31 = vmov 1934713408  }
  0x7c   : > { %1948 = vmatprep.subr.bf16.mxu0 %v2308_v0  ;;  %v409_v7 = vpack.c.bf16 %v408_v5, %v408_v5  ;;  %1956 = vmatprep.subr.bf16.mxu1 %v2308_v0  ;;  %v558_v28 = vunpack.c.l.s4 %v2314_v27  ;;  %v590_v32 = vunpack.c.l.s4 %v2315_v31  ;;  %s2595_s24 = sshll.u32 %s2528_s23, 4  ;;  %vm695_vm2 = vcmask 60416   ;;  %s2651_s21 = sshll.u32 %s2387_s9, 8 }
  0x7d   : > { %s2598_s26 = scalar_lea.vmem [#allocation10], %s2595_s24  ;;  %s2661_s10 = scalar_lea.hbm %s2819_s6, %s2651_s21 }
  0x7e   : > { %v559_v33 = vunpack.c.0.s8 %v558_v28  ;;  %v591_v37 = vunpack.c.0.s8 %v590_v32  ;;  %s1689_s13 = sshll.u32 %s2598_s26, 4  ;;  %s1666_s15 = scalar_lea.sflag [#allocation4], %s2528_s23  ;;  %s2668_s13 = int_to_ptr.vmem [resolvable:$true] %s1689_s13 }
  0x7f   : > { %1949 = vmatpush3.bf16.msra.mxu0 %v2057_v2  ;;  %1957 = vmatpush3.bf16.msra.mxu1 %v2059_v8  ;;  %s2168_s11 = scalar_lea.vmem %s2668_s13, 256  ;;  %p2850_p7 = scmp.ne.s32.totalorder %s2841_s17, 0 }
  0x80   : > { %v2574_v38 = vsub.s32 %v559_v33, %v561_v34  ;;  %v2576_v44 = vsub.s32 %v591_v37, %v561_v34  ;;  %p2169_p12 = scmp.ne.s32.totalorder %s2668_s13, %s2168_s11  ;;  %s2316_s29 = smov [#allocation10]  }
  0x82   : > { %1951 = vmatmul.mubr.msk.bf16.vlgmr.msra.gmra.mxu0 %vm433_vm1, %v409_v7  ;;  %1959 = vmatmul.mubr.msk.bf16.vlgmr.msra.gmra.mxu1 %vm433_vm1, %v478_v9  ;;  %p2170_p9 = pnand %p2169_p12, %p2850_p7 }
  0x84   : > { %p2171_p13 = pneg %p2170_p9 }
 0x142   : > { %v471_v11 = vpop.f32.mrf.mxu0  ;;  %v539_v14 = vpop.f32.mrf.mxu1 }
 0x143   : > { %v472_v12 = vadd.f32 %v1914_v10, %v471_v11  ;;  %v2565_v19 = vadd.f32 %v1918_v16, %v539_v14 }
 0x144   : > { %v1952_v13 = vpop.f32.mrf.mxu0  ;;  %v1960_v17 = vpop.f32.mrf.mxu1 }
 0x145   : > { %705 = vrot.lane.b32.xlu1 %v472_v12, %s2310_s14  ;;  %701 = vrot.lane.b32.xlu0 %v472_v12, %s2311_s22  ;;  %v477_v21 = vmul.f32 0.35355338, %v472_v12 }
 0x146   : > { %v474_v15 = vpop.f32.mrf.mxu0  ;;  %v542_v20 = vpop.f32.mrf.mxu1 }
 0x148   : > { %v1953_v18 = vpop.f32.mrf.mxu0  ;;  %v1961_v22 = vpop.f32.mrf.mxu1 }
 0x149   : > { %707 = vrot.lane.b32.xlu1 %v472_v12, %s2312_s16  ;;  %703 = vrot.lane.b32.xlu0 %v472_v12, %s2313_s18 }
 0x14d   : > { %1512 = vrot.lane.b32.xlu1 %v2565_v19, %s2311_s22  ;;  %549 = vrot.lane.b32.xlu0 %v477_v21, %s2313_s18 }
 0x151   : > { %546 = vrot.lane.b32.xlu1 %v477_v21, %s2311_s22 }
 0x155   : > { %552 = vrot.lane.b32.xlu1 %v477_v21, %s2310_s14 }
 0x1b7   : > { %v706_v23 = vpop.permute.xlu1 %705  ;;  %v702_v24 = vpop.permute.xlu0 %701 }
 0x1b8   : > { %709 = vrot.lane.b32.xlu0 %v702_v24, %s2312_s16 }
 0x1bb   : > { %v2570_v25 = vpop.permute.xlu1 %707  ;;  %v704_v26 = vpop.permute.xlu0 %703 }
 0x1bc   : > { %713 = vrot.lane.b32.xlu0 %v706_v23, %s2312_s16  ;;  %711 = vrot.lane.b32.xlu1 %v704_v26, %s2312_s16 }
 0x1bf   : > { %v2572_v30 = vpop.permute.xlu1 %1512  ;;  %v550_v35 = vpop.permute.xlu0 %549 }
 0x1c0   : > { %v555_v39 = vcombine.low %v477_v21, %v550_v35  ;;  %v556_v40 = vcombine.high %v477_v21, %v550_v35 }
 0x1c2   : > { %v563_v45 = vrot.slane %v555_v39, %v2574_v38  ;;  %v570_v46 = vrot.slane %v556_v40, %v2574_v38 }
 0x1c3   : > { %v547_v36 = vpop.permute.xlu1 %546 }
 0x1c7   : > { %v553_v41 = vpop.permute.xlu1 %552 }
 0x1c8   : > { %v571_v42 = vcombine.low %v547_v36, %v553_v41  ;;  %v572_v43 = vcombine.high %v547_v36, %v553_v41 }
 0x1ca   : > { %v579_v47 = vrot.slane %v571_v42, %v2574_v38  ;;  %v586_v48 = vrot.slane %v572_v43, %v2574_v38 }
 0x1cc   : > { %v587_v49 = vcombine.low %v563_v45, %v579_v47  ;;  %v588_v50 = vcombine.high %v563_v45, %v579_v47  ;;  %v603_v51 = vcombine.low %v570_v46, %v586_v48  ;;  %v604_v52 = vcombine.high %v570_v46, %v586_v48 }
 0x1ce   : > { %v595_v53 = vrot.slane %v587_v49, %v2576_v44  ;;  %v602_v54 = vrot.slane %v588_v50, %v2576_v44  ;;  %v611_v55 = vrot.slane %v603_v51, %v2576_v44  ;;  %v618_v56 = vrot.slane %v604_v52, %v2576_v44 }
 0x1d0   : > { %v623_v57 = vcombine.low %v595_v53, %v602_v54  ;;  %v1922_v58 = vcombine.high %v595_v53, %v602_v54  ;;  %v639_v59 = vcombine.low %v611_v55, %v618_v56  ;;  %v1923_v60 = vcombine.high %v611_v55, %v618_v56 }
 0x1d2   : > { %v630_v61 = vrot.slane %v623_v57, %v2574_v38  ;;  %v638_v62 = vrot.slane %v1922_v58, %v2574_v38  ;;  %v646_v63 = vrot.slane %v639_v59, %v2574_v38  ;;  %v654_v1 = vrot.slane %v1923_v60, %v2574_v38 }
 0x1d4   : > { %v655_v2 = vcombine.low %v630_v61, %v638_v62  ;;  %v656_v3 = vcombine.high %v630_v61, %v638_v62  ;;  %v671_v4 = vcombine.low %v646_v63, %v654_v1  ;;  %v672_v5 = vcombine.high %v646_v63, %v654_v1 }
 0x1d6   : > { %v663_v6 = vrot.slane %v655_v2, %v2576_v44  ;;  %v670_v7 = vrot.slane %v656_v3, %v2576_v44  ;;  %v679_v8 = vrot.slane %v671_v4, %v2576_v44  ;;  %v686_v9 = vrot.slane %v672_v5, %v2576_v44 }
 0x1d8   : > { %v687_v10 = vcombine.low %v663_v6, %v679_v8  ;;  %v688_v11 = vcombine.high %v663_v6, %v679_v8  ;;  %v689_v12 = vcombine.low %v670_v7, %v686_v9  ;;  %v690_v13 = vcombine.high %v670_v7, %v686_v9 }
 0x1da   : > { %v691_v14 = vpack.c.bf16 %v687_v10, %v687_v10  ;;  %v692_v15 = vpack.c.bf16 %v688_v11, %v688_v11  ;;  %v693_v16 = vpack.c.bf16 %v689_v12, %v689_v12  ;;  %v694_v17 = vpack.c.bf16 %v690_v13, %v690_v13 }
 0x1dc   : > { %696 = vst.msk [vmem:[%s2598_s26] sm:$0xf] %vm695_vm2, %v691_v14  ;;  %697 = vst.msk [vmem:[%s2598_s26 + $0x4] sm:$0xf] %vm695_vm2, %v692_v15 }
 0x1dd   : > { %698 = vst.msk [vmem:[%s2598_s26 + $0x8] sm:$0xf] %vm695_vm2, %v693_v16  ;;  %699 = vst.msk [vmem:[%s2598_s26 + $0xc] sm:$0xf] %vm695_vm2, %v694_v17 }
 0x22a   : > { %v710_v18 = vpop.permute.xlu0 %709 }
 0x22e   : > { %v714_v20 = vpop.permute.xlu0 %713  ;;  %v712_v21 = vpop.permute.xlu1 %711 }
 0x22f   : > { %v735_v22 = vcombine.low %v710_v18, %v714_v20  ;;  %v736_v23 = vcombine.high %v710_v18, %v714_v20  ;;  %v719_v24 = vcombine.low %v2570_v25, %v712_v21  ;;  %v720_v26 = vcombine.high %v2570_v25, %v712_v21 }
 0x231   : > { %v743_v27 = vrot.slane %v735_v22, %v2574_v38  ;;  %v750_v28 = vrot.slane %v736_v23, %v2574_v38  ;;  %v727_v29 = vrot.slane %v719_v24, %v2574_v38  ;;  %v734_v31 = vrot.slane %v720_v26, %v2574_v38 }
 0x233   : > { %v752_v32 = vcombine.high %v727_v29, %v743_v27  ;;  %v751_v33 = vcombine.low %v727_v29, %v743_v27  ;;  %v767_v36 = vcombine.low %v734_v31, %v750_v28  ;;  %v768_v39 = vcombine.high %v734_v31, %v750_v28 }
 0x235   : > { %v766_v34 = vrot.slane %v752_v32, %v2576_v44  ;;  %v759_v35 = vrot.slane %v751_v33, %v2576_v44  ;;  %v775_v37 = vrot.slane %v767_v36, %v2576_v44  ;;  %v782_v40 = vrot.slane %v768_v39, %v2576_v44 }
 0x237   : > { %851 = vxpose.xlu0.b32.start.end [1/1] (short) (narrow) %v766_v34, 8  ;;  %787 = vxpose.xlu1.b32.start.end [1/1] (short) (narrow) %v759_v35, 8  ;;  %v783_v25 = vcombine.high %v759_v35, %v2308_v0  ;;  %v784_v41 = vcombine.high %v766_v34, %v2308_v0  ;;  %v785_v42 = vcombine.high %v775_v37, %v2308_v0 }
 0x238   : > { %v786_v43 = vcombine.high %v782_v40, %v2308_v0 }
 0x23b   : > { %915 = vxpose.xlu1.b32.start.end [1/1] (short) (narrow) %v775_v37, 8  ;;  %819 = vxpose.xlu0.b32.start.end [1/1] (short) (narrow) %v783_v25, 8 }
 0x23f   : > { %979 = vxpose.xlu1.b32.start.end [1/1] (short) (narrow) %v782_v40, 8  ;;  %883 = vxpose.xlu0.b32.start.end [1/1] (short) (narrow) %v784_v41, 8 }
 0x243   : > { %947 = vxpose.xlu0.b32.start.end [1/1] (short) (narrow) %v785_v42, 8 }
 0x247   : > { %1011 = vxpose.xlu0.b32.start.end [1/1] (short) (narrow) %v786_v43, 8 }
 0x25d   : > { %1515 = vrot.lane.b32.xlu1 %v2565_v19, %s2313_s18 }
 0x270   : > { %1518 = vrot.lane.b32.xlu0 %v2565_v19, %s2310_s14  ;;  %s2172_s14 = sshll.u32 %s2316_s29, 4  ;;  %s2173_s14 = int_to_ptr.vmem [resolvable:$false] %s2172_s14 }
 0x271   : > { %s2174_s22 = scalar_lea.vmem %s2173_s14, 512  ;;  %p2175_p5 = scmp.lt.s32.totalorder %s2668_s13, %s2173_s14 }
 0x272   : > { %p2176_p1 = scmp.lt.s32.totalorder %s2174_s22, %s2168_s11 }
 0x274   : > { %p2177_p3 = por %p2176_p1, %p2175_p5 }
 0x276   : > { %p2178_p4 = pnand %p2177_p3, %p2171_p13 }
 0x2b3   : > { %v867_v45 = vpop.trf.xlu0  ;;  %v803_v46 = vpop.trf.xlu1 }
 0x2b4   : > { %v1043_v53 = vcombine.low %v803_v46, %v867_v45  ;;  %v1044_v58 = vcombine.high %v803_v46, %v867_v45 }
 0x2b6   : > { %v1051_v59 = vrot.slane %v1043_v53, %v2574_v38  ;;  %v1058_v5 = vrot.slane %v1044_v58, %v2574_v38 }
 0x2b7   : > { %v835_v47 = vpop.trf.xlu0  ;;  %v931_v48 = vpop.trf.xlu1 }
 0x2bb   : > { %v899_v49 = vpop.trf.xlu0  ;;  %v995_v51 = vpop.trf.xlu1 }
 0x2bc   : > { %v1059_v50 = vcombine.low %v835_v47, %v899_v49  ;;  %v1060_v54 = vcombine.high %v835_v47, %v899_v49  ;;  %v1075_v55 = vcombine.low %v931_v48, %v995_v51  ;;  %v1076_v56 = vcombine.high %v931_v48, %v995_v51 }
 0x2be   : > { %v1067_v0 = vrot.slane %v1059_v50, %v2574_v38  ;;  %v1074_v62 = vrot.slane %v1060_v54, %v2574_v38  ;;  %v1083_v63 = vrot.slane %v1075_v55, %v2574_v38  ;;  %v1090_v2 = vrot.slane %v1076_v56, %v2574_v38 }
 0x2bf   : > { %v963_v52 = vpop.trf.xlu0 }
 0x2c0   : > { %v1107_v1 = vcombine.low %v1051_v59, %v1067_v0  ;;  %v1108_v11 = vcombine.high %v1051_v59, %v1067_v0  ;;  %v1123_v12 = vcombine.low %v1058_v5, %v1074_v62  ;;  %v1124_v21 = vcombine.high %v1058_v5, %v1074_v62 }
 0x2c2   : > { %v1115_v9 = vrot.slane %v1107_v1, %v2576_v44  ;;  %v1122_v18 = vrot.slane %v1108_v11, %v2576_v44  ;;  %v1131_v20 = vrot.slane %v1123_v12, %v2576_v44  ;;  %v1138_v26 = vrot.slane %v1124_v21, %v2576_v44 }
 0x2c3   : > { %v1027_v57 = vpop.trf.xlu0 }
 0x2c4   : > { %v1091_v60 = vcombine.low %v963_v52, %v1027_v57  ;;  %v1092_v61 = vcombine.high %v963_v52, %v1027_v57 }
 0x2c6   : > { %v1099_v3 = vrot.slane %v1091_v60, %v2574_v38  ;;  %v1106_v4 = vrot.slane %v1092_v61, %v2574_v38 }
 0x2c8   : > { %v1139_v6 = vcombine.low %v1083_v63, %v1099_v3  ;;  %v1140_v7 = vcombine.high %v1083_v63, %v1099_v3  ;;  %v1155_v8 = vcombine.low %v1090_v2, %v1106_v4  ;;  %v1156_v13 = vcombine.high %v1090_v2, %v1106_v4 }
 0x2ca   : > { %v1147_v10 = vrot.slane %v1139_v6, %v2576_v44  ;;  %v1154_v16 = vrot.slane %v1140_v7, %v2576_v44  ;;  %v1163_v17 = vrot.slane %v1155_v8, %v2576_v44  ;;  %v1170_v24 = vrot.slane %v1156_v13, %v2576_v44 }
 0x2cc   : > { %v1172_v14 = vcombine.high %v1115_v9, %v1147_v10  ;;  %v1171_v15 = vcombine.low %v1115_v9, %v1147_v10  ;;  %v1173_v22 = vcombine.low %v1122_v18, %v1154_v16  ;;  %v1175_v23 = vcombine.low %v1131_v20, %v1163_v17 }
 0x2cd   : > { %v1174_v27 = vcombine.high %v1122_v18, %v1154_v16  ;;  %v1177_v28 = vcombine.low %v1138_v26, %v1170_v24  ;;  %v1176_v29 = vcombine.high %v1131_v20, %v1163_v17  ;;  %v1178_v31 = vcombine.high %v1138_v26, %v1170_v24 }
 0x2ce   : > { %1211 = vxpose.xlu0.b32.start.end [1/1] (short) (narrow) %v1172_v14, 8  ;;  %1179 = vxpose.xlu1.b32.start.end [1/1] (short) (narrow) %v1171_v15, 8 }
 0x2cf   : > { %v1516_v32 = vpop.permute.xlu1 %1515 }
 0x2d0   : > { %v1521_v33 = vcombine.low %v2565_v19, %v1516_v32  ;;  %v1522_v34 = vcombine.high %v2565_v19, %v1516_v32 }
 0x2d2   : > { %1243 = vxpose.xlu0.b32.start.end [1/1] (short) (narrow) %v1173_v22, 8  ;;  %1307 = vxpose.xlu1.b32.start.end [1/1] (short) (narrow) %v1175_v23, 8  ;;  %v1529_v25 = vrot.slane %v1521_v33, %v2574_v38  ;;  %v1536_v39 = vrot.slane %v1522_v34, %v2574_v38 }
 0x2d6   : > { %1275 = vxpose.xlu0.b32.start.end [1/1] (short) (narrow) %v1174_v27, 8  ;;  %1371 = vxpose.xlu1.b32.start.end [1/1] (short) (narrow) %v1177_v28, 8 }
 0x2da   : > { %1339 = vxpose.xlu0.b32.start.end [1/1] (short) (narrow) %v1176_v29, 8 }
 0x2de   : > { %1403 = vxpose.xlu0.b32.start.end [1/1] (short) (narrow) %v1178_v31, 8 }
 0x2e2   : > { %v1519_v35 = vpop.permute.xlu0 %1518 }
 0x2e3   : > { %v1537_v36 = vcombine.low %v2572_v30, %v1519_v35  ;;  %v1538_v37 = vcombine.high %v2572_v30, %v1519_v35 }
 0x2e5   : > { %v1545_v40 = vrot.slane %v1537_v36, %v2574_v38  ;;  %v1552_v41 = vrot.slane %v1538_v37, %v2574_v38 }
 0x2e7   : > { %v1553_v42 = vcombine.low %v1529_v25, %v1545_v40  ;;  %v1554_v43 = vcombine.high %v1529_v25, %v1545_v40  ;;  %v1569_v45 = vcombine.low %v1536_v39, %v1552_v41  ;;  %v1570_v46 = vcombine.high %v1536_v39, %v1552_v41 }
 0x2e9   : > { %v1561_v19 = vrot.slane %v1553_v42, %v2576_v44  ;;  %v1568_v30 = vrot.slane %v1554_v43, %v2576_v44  ;;  %v1577_v47 = vrot.slane %v1569_v45, %v2576_v44  ;;  %v1584_v48 = vrot.slane %v1570_v46, %v2576_v44 }
 0x2eb   : > { %v1589_v49 = vcombine.low %v1561_v19, %v1568_v30  ;;  %v1924_v50 = vcombine.high %v1561_v19, %v1568_v30  ;;  %v1605_v51 = vcombine.low %v1577_v47, %v1584_v48  ;;  %v1925_v52 = vcombine.high %v1577_v47, %v1584_v48 }
 0x2ed   : > { %v1596_v53 = vrot.slane %v1589_v49, %v2574_v38  ;;  %v1604_v54 = vrot.slane %v1924_v50, %v2574_v38  ;;  %v1612_v55 = vrot.slane %v1605_v51, %v2574_v38  ;;  %v1620_v0 = vrot.slane %v1925_v52, %v2574_v38 }
 0x2ee   : > { %2181 = shalt.err (!%p2178_p4)
}
 0x2ef   : > { %s2182_s19 = scalar_lea.hbm %s2661_s10, 256  ;;  %s2186_s18 = scalar_lea.hbm %s2819_s6, 512 }
 0x2f0   : > { %p2183_p10 = scmp.ne.s32.totalorder %s2661_s10, %s2182_s19  ;;  %p2187_p11 = scmp.lt.s32.totalorder %s2661_s10, %s2819_s6 }
 0x2f1   : > { %p2188_p2 = scmp.lt.s32.totalorder %s2186_s18, %s2182_s19 }
 0x2f2   : > { %p2184_p0 = pnand %p2183_p10, %p2850_p7 }
 0x2f3   : > { %p2189_p6 = por %p2188_p2, %p2187_p11 }
 0x2f4   : > { %p2185_p8 = pneg %p2184_p0 }
 0x2f6   : > { %p2190_p12 = pnand %p2189_p6, %p2185_p8 }
 0x2f8   : > { %2193 = shalt.err (!%p2190_p12)
}
 0x2f9   : > { %s2317_s25 = smov 64   ;;  %s2318_s11 = smov 4   ;;  %v1621_v56 = vcombine.low %v1596_v53, %v1604_v54  ;;  %v1622_v57 = vcombine.high %v1596_v53, %v1604_v54  ;;  %v1637_v58 = vcombine.low %v1612_v55, %v1620_v0  ;;  %v1638_v59 = vcombine.high %v1612_v55, %v1620_v0 }
 0x2fa   : > { %1974 = dma.vmem_to_hbm [thread:$0]  (%p2850_p7), %s2668_s13, 256, %s2661_s10, %s1666_s15, %s2317_s25, %s2317_s25, %s2318_s11  }
 0x2fb   : > { %v1629_v60 = vrot.slane %v1621_v56, %v2576_v44  ;;  %v1636_v61 = vrot.slane %v1622_v57, %v2576_v44  ;;  %v1645_v62 = vrot.slane %v1637_v58, %v2576_v44  ;;  %v1652_v63 = vrot.slane %v1638_v59, %v2576_v44  ;;  %s2701_s23 = scalar_lea.vmem [#allocation13], %s2595_s24  ;;  %s397_s10 = scalar_lea.vmem [#allocation11], %s2595_s24 }
 0x2fc   : > { %s1705_s13 = sshll.u32 %s397_s10, 4  ;;  %s1721_s15 = sshll.u32 %s2701_s23, 4  ;;  %s2727_s13 = int_to_ptr.vmem [resolvable:$true] %s1705_s13  ;;  %s2735_s15 = int_to_ptr.vmem [resolvable:$true] %s1721_s15 }
 0x2fd   : > { %v1653_v1 = vcombine.low %v1629_v60, %v1645_v62  ;;  %v1654_v2 = vcombine.high %v1629_v60, %v1645_v62  ;;  %v1655_v3 = vcombine.low %v1636_v61, %v1652_v63  ;;  %v1656_v4 = vcombine.high %v1636_v61, %v1652_v63  ;;  %s2725_s22 = scalar_lea.hbm %s2820_s7, %s2651_s21  ;;  %s2733_s20 = scalar_lea.hbm %s2821_s8, %s2651_s21 }
 0x2fe   : > { %s2743_s16 = scalar_lea.sflag [#allocation12], %s345_s2  ;;  %s2194_s18 = scalar_lea.vmem %s2727_s13, 256 }
 0x2ff   : > { %v1657_v5 = vpack.c.bf16 %v1653_v1, %v1653_v1  ;;  %v1658_v6 = vpack.c.bf16 %v1654_v2, %v1654_v2  ;;  %v1659_v7 = vpack.c.bf16 %v1655_v3, %v1655_v3  ;;  %v1660_v8 = vpack.c.bf16 %v1656_v4, %v1656_v4  ;;  %p2195_p9 = scmp.ne.s32.totalorder %s2727_s13, %s2194_s18  ;;  %s2319_s21 = smov [#allocation11]  }
 0x300   : > { %s2198_s26 = sshll.u32 %s2319_s21, 4  ;;  %s2199_s26 = int_to_ptr.vmem [resolvable:$false] %s2198_s26 }
 0x301   : > { %1661 = vst.msk [vmem:[%s2701_s23] sm:$0xf] %vm695_vm2, %v1657_v5  ;;  %1662 = vst.msk [vmem:[%s2701_s23 + $0x4] sm:$0xf] %vm695_vm2, %v1658_v6  ;;  %p2196_p13 = pnand %p2195_p9, %p2850_p7  ;;  %s2200_s4 = scalar_lea.vmem %s2199_s26, 512 }
 0x302   : > { %1663 = vst.msk [vmem:[%s2701_s23 + $0x8] sm:$0xf] %vm695_vm2, %v1659_v7  ;;  %1664 = vst.msk [vmem:[%s2701_s23 + $0xc] sm:$0xf] %vm695_vm2, %v1660_v8  ;;  %p2201_p1 = scmp.lt.s32.totalorder %s2727_s13, %s2199_s26  ;;  %p2202_p3 = scmp.lt.s32.totalorder %s2200_s4, %s2194_s18 }
 0x303   : > { %p2197_p5 = pneg %p2196_p13 }
 0x304   : > { %p2203_p4 = por %p2202_p3, %p2201_p1 }
 0x306   : > { %p2204_p10 = pnand %p2203_p4, %p2197_p5 }
 0x34a   : > { %v1227_v9 = vpop.trf.xlu0  ;;  %v1195_v10 = vpop.trf.xlu1 }
 0x34e   : > { %v1259_v11 = vpop.trf.xlu0  ;;  %v1323_v12 = vpop.trf.xlu1 }
 0x34f   : > { %v1435_v17 = vcombine.low %v1195_v10, %v1259_v11 }
 0x351   : > { %v1442_v22 = vrot.slane %v1435_v17, %v2574_v38 }
 0x352   : > { %v1291_v13 = vpop.trf.xlu0  ;;  %v1387_v15 = vpop.trf.xlu1 }
 0x353   : > { %v1443_v14 = vcombine.low %v1227_v9, %v1291_v13  ;;  %v1451_v20 = vcombine.low %v1323_v12, %v1387_v15 }
 0x355   : > { %v1450_v18 = vrot.slane %v1443_v14, %v2574_v38  ;;  %v1458_v27 = vrot.slane %v1451_v20, %v2574_v38 }
 0x356   : > { %v1355_v16 = vpop.trf.xlu0 }
 0x357   : > { %v1467_v24 = vcombine.low %v1442_v22, %v1450_v18  ;;  %v1468_v26 = vcombine.high %v1442_v22, %v1450_v18 }
 0x359   : > { %v1475_v32 = vrot.slane %v1467_v24, %v2576_v44  ;;  %v1482_v33 = vrot.slane %v1468_v26, %v2576_v44 }
 0x35a   : > { %v1419_v21 = vpop.trf.xlu0 }
 0x35b   : > { %v1459_v23 = vcombine.low %v1355_v16, %v1419_v21 }
 0x35d   : > { %v1466_v28 = vrot.slane %v1459_v23, %v2574_v38 }
 0x35f   : > { %v1483_v29 = vcombine.low %v1458_v27, %v1466_v28  ;;  %v1484_v31 = vcombine.high %v1458_v27, %v1466_v28 }
 0x361   : > { %v1491_v34 = vrot.slane %v1483_v29, %v2576_v44  ;;  %v1498_v35 = vrot.slane %v1484_v31, %v2576_v44 }
 0x363   : > { %v1499_v36 = vcombine.low %v1475_v32, %v1491_v34  ;;  %v1500_v37 = vcombine.high %v1475_v32, %v1491_v34  ;;  %v1501_v25 = vcombine.low %v1482_v33, %v1498_v35  ;;  %v1502_v39 = vcombine.high %v1482_v33, %v1498_v35 }
 0x365   : > { %v1503_v38 = vpack.c.bf16 %v1499_v36, %v1499_v36  ;;  %v1504_v40 = vpack.c.bf16 %v1500_v37, %v1500_v37  ;;  %v1505_v41 = vpack.c.bf16 %v1501_v25, %v1501_v25  ;;  %v1506_v42 = vpack.c.bf16 %v1502_v39, %v1502_v39 }
 0x367   : > { %1507 = vst.msk [vmem:[%s397_s10] sm:$0xf] %vm695_vm2, %v1503_v38  ;;  %1508 = vst.msk [vmem:[%s397_s10 + $0x4] sm:$0xf] %vm695_vm2, %v1504_v40 }
 0x368   : > { %1509 = vst.msk [vmem:[%s397_s10 + $0x8] sm:$0xf] %vm695_vm2, %v1505_v41  ;;  %1510 = vst.msk [vmem:[%s397_s10 + $0xc] sm:$0xf] %vm695_vm2, %v1506_v42 }
 0x369   : > { %2207 = shalt.err (!%p2204_p10)
}
 0x36a   : > { %s2208_s9 = scalar_lea.hbm %s2725_s22, 256  ;;  %s2212_s10 = scalar_lea.hbm %s2820_s7, 512 }
 0x36b   : > { %p2209_p0 = scmp.ne.s32.totalorder %s2725_s22, %s2208_s9  ;;  %p2213_p2 = scmp.lt.s32.totalorder %s2725_s22, %s2820_s7 }
 0x36c   : > { %p2214_p6 = scmp.lt.s32.totalorder %s2212_s10, %s2208_s9 }
 0x36d   : > { %p2210_p8 = pnand %p2209_p0, %p2850_p7 }
 0x36e   : > { %p2215_p12 = por %p2214_p6, %p2213_p2 }
 0x36f   : > { %p2211_p11 = pneg %p2210_p8 }
 0x371   : > { %p2216_p9 = pnand %p2215_p12, %p2211_p11 }
 0x373   : > { %2219 = shalt.err (!%p2216_p9)
}
 0x374   : > { %1975 = dma.vmem_to_hbm [thread:$0]  (%p2850_p7), %s2727_s13, 256, %s2725_s22, %s2743_s16, %s2317_s25, %s2317_s25, %s2318_s11  }
 0x375   : > { %s2220_s24 = scalar_lea.vmem %s2735_s15, 256  ;;  %s2320_s19 = smov [#allocation13]  }
 0x376   : > { %p2221_p13 = scmp.ne.s32.totalorder %s2735_s15, %s2220_s24  ;;  %s2224_s18 = sshll.u32 %s2320_s19, 4  ;;  %s2225_s18 = int_to_ptr.vmem [resolvable:$false] %s2224_s18 }
 0x377   : > { %s2226_s21 = scalar_lea.vmem %s2225_s18, 512  ;;  %p2227_p3 = scmp.lt.s32.totalorder %s2735_s15, %s2225_s18 }
 0x378   : > { %p2222_p5 = pnand %p2221_p13, %p2850_p7  ;;  %p2228_p4 = scmp.lt.s32.totalorder %s2226_s21, %s2220_s24 }
 0x37a   : > { %p2223_p1 = pneg %p2222_p5  ;;  %p2229_p10 = por %p2228_p4, %p2227_p3 }
 0x37c   : > { %p2230_p0 = pnand %p2229_p10, %p2223_p1 }
 0x37e   : > { %2233 = shalt.err (!%p2230_p0)
}
 0x37f   : > { %s2234_s26 = scalar_lea.hbm %s2733_s20, 256  ;;  %s2238_s4 = scalar_lea.hbm %s2821_s8, 512 }
 0x380   : > { %p2235_p8 = scmp.ne.s32.totalorder %s2733_s20, %s2234_s26  ;;  %p2239_p6 = scmp.lt.s32.totalorder %s2733_s20, %s2821_s8 }
 0x381   : > { %p2240_p12 = scmp.lt.s32.totalorder %s2238_s4, %s2234_s26 }
 0x382   : > { %p2236_p11 = pnand %p2235_p8, %p2850_p7 }
 0x383   : > { %p2241_p9 = por %p2240_p12, %p2239_p6 }
 0x384   : > { %p2237_p2 = pneg %p2236_p11 }
 0x386   : > { %p2242_p13 = pnand %p2241_p9, %p2237_p2 }
 0x388   : > { %2245 = shalt.err (!%p2242_p13)
}
 0x389   : > { %1976 = dma.vmem_to_hbm [thread:$0]  (%p2850_p7), %s2735_s15, 256, %s2733_s20, %s2743_s16, %s2317_s25, %s2317_s25, %s2318_s11  }
 0x38a PF: > { %s1736_s23 = sand.u32 1, %s2288_s27   ;;  %p2851_p5 = scmp.ne.s32.totalorder %s2834_s12, 0 }
 0x38b   : > { %p2852_p1 = scmp.ge.s32.totalorder %s2300_s30, 2  ;;  %s1737_s10 = scalar_lea.sflag [#allocation4], %s1736_s23 }
 0x38d   : > { %p1995_p3 = pnand %p2852_p1, %p2851_p5 }
 0x38f   : > { %p1996_p4 = pneg %p1995_p3 }
 0x391   : > { %2279 = dma.done.wait (%p1996_p4), %s1737_s10, 256  }
 0x392   : > { %2281 = vsyncadd (%p1996_p4), %s1737_s10, 4294967040  ;;  %s2853_s17 = sadd.s32 4294967294, %s2300_s30  }
 0x393   : > { %s1745_s29 = sand.u32 1, %s2853_s17  }
 0x394   : > { %s1746_s14 = scalar_lea.sflag [#allocation12], %s1745_s29 }
 0x395   : > { %2283 = dma.done.wait (%p1996_p4), %s1746_s14, 512  }
 0x396   : > { %2285 = vsyncadd (%p1996_p4), %s1746_s14, 4294966784  ;;  %s2854_s30 = sld [smem:[#allocation21_spill]]  ;;  %s2857_s27 = smov %s2292_s28 }
 0x397   : > { %s2855_s25 = sld [smem:[#allocation20_spill]] }
 0x398   : > { %s2856_s29 = sld [smem:[#allocation22_spill]] }
 0x39c   : > { %p29_p7 = scmp.ge.s32.totalorder %s2854_s30, 4  }
 0x39d   : > { %s2858_s28 = smov %s2855_s25 }
 0x39e   :  { %31 = sbr.rel (!%p29_p7) target bundleno = 13 (0xd), region = 142 }
 0x3a3   :  { %1760 = vsyncpa [#allocation3], 1 }
 0x3a4   :  { %1762 = vsyncpa [#allocation3 + $0x1], 1 }
 0x3a5   :  { %1763 = vsyncpa [#allocation6], 1 }
 0x3a6   :  { %1765 = vsyncpa [#allocation6 + $0x1], 1 }
 0x3a7   :  { %1766 = vsyncpa [#allocation9], 1 }
 0x3a8   :  { %1767 = vsyncpa [#allocation4], 1 }
 0x3a9   :  { %1769 = vsyncpa [#allocation4 + $0x1], 1 }
 0x3aa   :  { %1770 = vsyncpa [#allocation12], 1 }
 0x3ab   :  { %1772 = vsyncpa [#allocation12 + $0x1], 1 }

// kernel: tpu_custom_call.1
= control target key start
LH: loop header
LB: loop body
LE: loop exit
PB: predicated region body
PF: predicated region fallthrough
CT: control target
= control target key end

     0   :  { %s2813_s0 = inlined_call_operand.hbm [shape: f32[2,8,32], index: 0, kind: input, shape index: {}]   ;;  %s2814_s1 = inlined_call_operand.hbm [shape: f32[2,8,32], index: 1, kind: input, shape index: {}]   ;;  %s2815_s2 = inlined_call_operand.hbm [shape: bf16[32,64], index: 2, kind: input, shape index: {}]   ;;  %s2816_s3 = inlined_call_operand.vmem [shape: f32[1,64], index: 3, kind: input, shape index: {}]   ;;  %s2817_s4 = inlined_call_operand.hbm [shape: bf16[32,32], index: 4, kind: input, shape index: {}]   ;;  %s2818_s5 = inlined_call_operand.vmem [shape: f32[1,32], index: 5, kind: input, shape index: {}]   ;;  %s2819_s6 = inlined_call_operand.hbm [shape: bf16[2,4,8,8], index: 6, kind: output, shape index: {0}]   ;;  %s2820_s7 = inlined_call_operand.hbm [shape: bf16[2,4,8,8], index: 7, kind: output, shape index: {1}]   ;;  %s2821_s8 = inlined_call_operand.hbm [shape: bf16[2,4,8,8], index: 8, kind: output, shape index: {2}]  }
   0x1   :  { %2830 = sst [smem:[#allocation23_spill]] %s2815_s2 }
   0x2   :  { %2831 = sst [smem:[#allocation24_spill]] %s2817_s4 }
   0x3   :  { %14 = vsyncpa [#allocation3], 0 }
   0x4   :  { %16 = vsyncpa [#allocation3 + $0x1], 0 }
   0x5   :  { %17 = vsyncpa [#allocation6], 0 }
   0x6   :  { %19 = vsyncpa [#allocation6 + $0x1], 0 }
   0x7   :  { %20 = vsyncpa [#allocation9], 0 }
   0x8   :  { %21 = vsyncpa [#allocation4], 0 }
   0x9   :  { %23 = vsyncpa [#allocation4 + $0x1], 0 }
   0xa   :  { %24 = vsyncpa [#allocation12], 0 }
   0xb   :  { %26 = vsyncpa [#allocation12 + $0x1], 0  ;;  %s2366_s27 = smov 0   ;;  %s2368_s28 = smov 0  }
   0xc   :  { %s2370_s29 = smov 0   ;;  %s2372_s30 = smov 0  }
   0xd LB: > { %2832 = sst [smem:[#allocation20_spill]] %s2296_s29  ;;  %s2387_s9 = sadd.s32 4294967295, %s2300_s30   ;;  %s2300_s30 = sphi %s2372_s30, %s2854_s30   ;;  %s2296_s29 = sphi %s2370_s29, %s2856_s29   ;;  %s2292_s28 = sphi %s2368_s28, %s2858_s28   ;;  %s2288_s27 = sphi %s2366_s27, %s2857_s27  }
   0xe   : > { %s2823_s10 = sadd.s32 4294967294, %s2300_s30   ;;  %p52_p0 = scmp.ne.s32.totalorder %s2292_s28, %s2288_s27 }
   0xf   : > { %p2822_p1 = scmp.eq.s32.totalorder %s2387_s9, 0  ;;  %p192_p3 = scmp.eq.s32.totalorder %s2823_s10, 1 }
  0x10   : > { %p1898_p5 = scmp.ge.s32.totalorder %s2300_s30, 1  ;;  %p251_p7 = scmp.lt.s32.totalorder %s2300_s30, 3 }
  0x11   : > { %p2398_p4 = por %p2822_p1, %p52_p0  ;;  %p2403_p6 = por %p192_p3, %p52_p0 }
  0x12   : > { %p2408_p8 = pnand %p1898_p5, %p251_p7  ;;  %s2302_s14 = smov [#allocation7]  }
  0x13   : > { %s2833_s11 = scalar_select %p2398_p4, 1, 0 }
  0x14   : > { %s2834_s12 = scalar_select %p2403_p6, 1, 0 }
  0x15   : > { %s2835_s13 = scalar_select %p2408_p8, 1, 0 }
  0x16   : > { %s263_s15 = sshll.u32 %s2302_s14, 4  ;;  %p1980_p9 = pneg %p2408_p8  ;;  %s264_s15 = int_to_ptr.vmem [resolvable:$true] %s263_s15 }
  0x17   : > { %s2303_s17 = smov [#allocation8]   ;;  %s2071_s19 = scalar_lea.vmem %s264_s15, 256 }
  0x18   : > { %p2417_p11 = pnand %p1980_p9, %p2822_p1  ;;  %s279_s18 = sshll.u32 %s2303_s17, 4  ;;  %s280_s18 = int_to_ptr.vmem [resolvable:$true] %s279_s18 }
  0x19   : > { %p2072_p13 = scmp.ne.s32.totalorder %s264_s15, %s2071_s19  ;;  %p2079_p5 = scmp.lt.s32.totalorder %s264_s15, %s264_s15 }
  0x1a   : > { %p2062_p12 = pneg %p2417_p11  ;;  %p2080_p7 = scmp.lt.s32.totalorder %s2071_s19, %s2071_s19 }
  0x1c   : > { %p2074_p0 = pnand %p2072_p13, %p2062_p12  ;;  %p2081_p10 = por %p2080_p7, %p2079_p5 }
  0x1e   : > { %p2075_p3 = pneg %p2074_p0 }
  0x20   : > { %p2082_p9 = pnand %p2081_p10, %p2075_p3 }
  0x22   : > { %2085 = shalt.err (!%p2082_p9)
}
  0x23   : > { %s2304_s20 = smov 64   ;;  %s2305_s21 = smov 4  }
  0x24   : > { %s2837_s2 = sld [smem:[#allocation23_spill]]  ;;  %s2097_s24 = scalar_lea.vmem %s280_s18, 256 }
  0x25   : > { %p2098_p1 = scmp.ne.s32.totalorder %s280_s18, %s2097_s24  ;;  %p2105_p2 = scmp.lt.s32.totalorder %s280_s18, %s280_s18 }
  0x26   : > { %p2106_p6 = scmp.lt.s32.totalorder %s2097_s24, %s2097_s24 }
  0x27   : > { %p2100_p13 = pnand %p2098_p1, %p2062_p12 }
  0x28   : > { %p2107_p5 = por %p2106_p6, %p2105_p2 }
  0x29   : > { %p2101_p0 = pneg %p2100_p13 }
  0x2a   : > { %1983 = dma.hbm_to_vmem [thread:$0]  (!%p2417_p11), %s2837_s2, 256, %s264_s15, [#allocation6], %s2304_s20, %s2304_s20, %s2305_s21  }
  0x2b   : > { %p2108_p10 = pnand %p2107_p5, %p2101_p0 }
  0x2d   : > { %2111 = shalt.err (!%p2108_p10)
}
  0x2e   : > { %s2838_s4 = sld [smem:[#allocation24_spill]]  ;;  %s2440_s14 = sadd.s32 1, %s2300_s30  }
  0x2f   : > { %2839 = sst [smem:[#allocation21_spill]] %s2440_s14  ;;  %s39_s15 = sadd.s32 1, %s2296_s29 }
  0x30   : > { %s36_s16 = ssub.s32 %s2300_s30, %s2440_s14  ;;  %p46_p1 = scmp.ne.s32.totalorder %s2296_s29, %s2292_s28 }
  0x31   : > { %p37_p2 = scmp.eq.s32.totalorder %s36_s16, 0  ;;  %p47_p6 = scmp.eq.s32.totalorder %s2300_s30, 0 }
  0x32   : > { %p2840_p12 = scmp.eq.s32.totalorder %s2387_s9, 1  ;;  %p2006_p7 = scmp.lt.s32.totalorder %s2300_s30, 2 }
  0x33   : > { %s2456_s19 = scalar_select %p37_p2, %s2296_s29, %s39_s15  }
  0x34   : > { %1986 = dma.hbm_to_vmem [thread:$0]  (!%p2417_p11), %s2838_s4, 256, %s280_s18, [#allocation9], %s2304_s20, %s2304_s20, %s2305_s21  }
  0x35   : > { %p2450_p3 = por %p2840_p12, %p46_p1  ;;  %2842 = sst [smem:[#allocation22_spill]] %s2456_s19 }
  0x36   : > { %p48_p9 = por %p47_p6, %p46_p1  ;;  %s296_s22 = sand.u32 1, %s2296_s29  }
  0x37   : > { %s2841_s17 = scalar_select %p2450_p3, 1, 0 }
  0x38   : > { %s2459_s18 = sshll.u32 %s296_s22, 3  ;;  %s1903_s20 = sshll.u32 %s2300_s30, 7 }
  0x39   : > { %s2465_s24 = scalar_lea.hbm %s2813_s0, %s1903_s20  ;;  %s300_s25 = scalar_lea.vmem [#allocation2], %s2459_s18 }
  0x3a   : > { %s307_s26 = sshll.u32 %s300_s25, 4  ;;  %p2470_p11 = pnand %p2006_p7, %p48_p9  ;;  %s2468_s26 = int_to_ptr.vmem [resolvable:$true] %s307_s26 }
  0x3b   : > { %s2477_s2 = scalar_lea.hbm %s2814_s1, %s1903_s20  ;;  %s314_s21 = sand.u32 1, %s2300_s30  }
  0x3c   : > { %s297_s23 = scalar_lea.sflag [#allocation3], %s296_s22  ;;  %s2112_s4 = scalar_lea.hbm %s2465_s24, 128 }
  0x3d   : > { %p2113_p13 = scmp.ne.s32.totalorder %s2465_s24, %s2112_s4  ;;  %p2114_p0 = pneg %p2470_p11 }
  0x3e   : > { %s2117_s29 = scalar_lea.hbm %s2813_s0, 256  ;;  %p2118_p1 = scmp.lt.s32.totalorder %s2465_s24, %s2813_s0 }
  0x3f   : > { %p2115_p5 = pnand %p2114_p0, %p2113_p13  ;;  %p2119_p2 = scmp.lt.s32.totalorder %s2117_s29, %s2112_s4 }
  0x41   : > { %p2116_p10 = pneg %p2115_p5  ;;  %p2120_p6 = por %p2119_p2, %p2118_p1 }
  0x43   : > { %p2121_p12 = pnand %p2120_p6, %p2116_p10 }
  0x45   : > { %2124 = shalt.err (!%p2121_p12)
}
  0x46   : > { %s2125_s22 = scalar_lea.vmem %s2468_s26, 128  ;;  %s2306_s19 = smov [#allocation2]  }
  0x47   : > { %p2126_p7 = scmp.ne.s32.totalorder %s2468_s26, %s2125_s22  ;;  %s2130_s20 = sshll.u32 %s2306_s19, 4  ;;  %s2131_s20 = int_to_ptr.vmem [resolvable:$false] %s2130_s20 }
  0x48   : > { %s2132_s16 = scalar_lea.vmem %s2131_s20, 256  ;;  %p2133_p5 = scmp.lt.s32.totalorder %s2468_s26, %s2131_s20 }
  0x49   : > { %p2128_p9 = pnand %p2126_p7, %p2114_p0  ;;  %p2134_p3 = scmp.lt.s32.totalorder %s2132_s16, %s2125_s22 }
  0x4b   : > { %p2129_p13 = pneg %p2128_p9  ;;  %p2135_p4 = por %p2134_p3, %p2133_p5 }
  0x4d   : > { %p2136_p1 = pnand %p2135_p4, %p2129_p13 }
  0x4f   : > { %2139 = shalt.err (!%p2136_p1)
}
  0x50   : > { %1990 = dma.hbm_to_vmem [thread:$0]  (!%p2470_p11), %s2465_s24, 128, %s2468_s26, %s297_s23  }
  0x51   : > { %s318_s4 = scalar_lea.vmem [#allocation5], %s2459_s18  ;;  %s315_s14 = scalar_lea.sflag [#allocation6], %s314_s21 }
  0x52   : > { %s325_s29 = sshll.u32 %s318_s4, 4  ;;  %s2140_s25 = scalar_lea.hbm %s2477_s2, 128  ;;  %s326_s29 = int_to_ptr.vmem [resolvable:$true] %s325_s29 }
  0x53   : > { %p2141_p3 = scmp.ne.s32.totalorder %s2477_s2, %s2140_s25  ;;  %s2145_s19 = scalar_lea.hbm %s2814_s1, 256 }
  0x54   : > { %p2146_p2 = scmp.lt.s32.totalorder %s2477_s2, %s2814_s1  ;;  %p2147_p6 = scmp.lt.s32.totalorder %s2145_s19, %s2140_s25 }
  0x55   : > { %p2143_p4 = pnand %p2141_p3, %p2114_p0 }
  0x56   : > { %p2148_p12 = por %p2147_p6, %p2146_p2 }
  0x57   : > { %p2144_p10 = pneg %p2143_p4 }
  0x59   : > { %p2149_p7 = pnand %p2148_p12, %p2144_p10 }
  0x5b   : > { %2152 = shalt.err (!%p2149_p7)
}
  0x5c   : > { %s2153_s18 = scalar_lea.vmem %s326_s29, 128  ;;  %s2307_s24 = smov [#allocation5]  }
  0x5d   : > { %p2154_p9 = scmp.ne.s32.totalorder %s326_s29, %s2153_s18  ;;  %s2158_s26 = sshll.u32 %s2307_s24, 4  ;;  %s2159_s26 = int_to_ptr.vmem [resolvable:$false] %s2158_s26 }
  0x5e   : > { %s2160_s21 = scalar_lea.vmem %s2159_s26, 256  ;;  %p2161_p1 = scmp.lt.s32.totalorder %s326_s29, %s2159_s26 }
  0x5f   : > { %p2156_p13 = pnand %p2154_p9, %p2114_p0  ;;  %p2162_p3 = scmp.lt.s32.totalorder %s2160_s21, %s2153_s18 }
  0x61   : > { %p2157_p5 = pneg %p2156_p13  ;;  %p2163_p4 = por %p2162_p3, %p2161_p1 }
  0x63   : > { %p2164_p8 = pnand %p2163_p4, %p2157_p5 }
  0x65   : > { %2167 = shalt.err (!%p2164_p8)
}
  0x66   : > { %1993 = dma.hbm_to_vmem [thread:$0]  (!%p2470_p11), %s2477_s2, 128, %s326_s29, %s315_s14  }
  0x67   : > { %p2844_p10 = scmp.ne.s32.totalorder %s2835_s13, 0 }
  0x68   : > { %s2528_s23 = sand.u32 (!%p2844_p10), 1, %s2292_s28   ;;  %p2845_p0 = scmp.ne.s32.totalorder (!%p2844_p10), %s2833_s11, 0 }
  0x69   : > { %334 = sbr.rel (%p2844_p10) target bundleno = 906 (0x38a), region = 44  ;;  %s1907_s4 = sshll.u32 (!%p2844_p10), %s2528_s23, 3 }
  0x6a   : > { %s337_s25 = scalar_lea.sflag (!%p2844_p10), [#allocation3], %s2528_s23  ;;  %s340_s10 = scalar_lea.vmem (!%p2844_p10), [#allocation2], %s1907_s4 }
  0x6e   : > { %2263 = dma.done.wait (%p2845_p0), %s337_s25, 128  }
  0x6f   : > { %2265 = vsyncadd (%p2845_p0), %s337_s25, 4294967168  ;;  %s345_s2 = sand.u32 1, %s2387_s9   ;;  %s349_s15 = scalar_lea.vmem [#allocation5], %s1907_s4 }
  0x70   : > { %s346_s13 = scalar_lea.sflag [#allocation6], %s345_s2 }
  0x71   : > { %2267 = dma.done.wait (%p2845_p0), %s346_s13, 128  }
  0x72   : > { %2269 = vsyncadd (%p2845_p0), %s346_s13, 4294967168  ;;  %p2846_p8 = scmp.eq.s32.totalorder %s2387_s9, 0 }
  0x74   : > { %2271 = dma.done.wait (%p2846_p8), [#allocation6], 256   ;;  %p2847_p11 = pmov %p2846_p8 }
  0x75   : > { %p2848_p2 = pmov %p2846_p8 }
  0x76   : > { %2273 = vsyncadd (%p2847_p11), [#allocation6], 4294967040 }
  0x77   : > { %2275 = dma.done.wait (%p2848_p2), [#allocation9], 256   ;;  %p2849_p6 = pmov %p2848_p2 }
  0x78   : > { %v2308_v0 = vmov 0.0   ;;  %vm2309_vm0 = vmmov 0   ;;  %v2056_v1 = vld [vmem:[#allocation7 + $0x8] sm:$0xff]   ;;  %v2057_v2 = vld [vmem:[#allocation7] sm:$0xff]   ;;  %v407_v4 = vld [vmem:[%s349_s15] sm:$0xff]  ;;  %vm433_vm1 = vcmask 261120   ;;  %v560_v29 = vlaneseq }
  0x79   : > { %2277 = vsyncadd (%p2849_p6), [#allocation9], 4294967040  ;;  %1946 = vmatprep.subr.bf16.mxu0 %v2308_v0  ;;  %1950 = vmatprep.mubr.msk.bf16.mxu0 %vm2309_vm0, %v2308_v0  ;;  %v406_v3 = vld [vmem:[%s340_s10] sm:$0xff]  ;;  %v2058_v6 = vld [vmem:[#allocation8 + $0x8] sm:$0xff]   ;;  %s2310_s14 = smov 104   ;;  %s2311_s22 = smov 120  }
  0x7a   : > { %1954 = vmatprep.subr.bf16.mxu1 %v2308_v0  ;;  %1958 = vmatprep.mubr.msk.bf16.mxu1 %vm2309_vm0, %v2308_v0  ;;  %v408_v5 = vadd.f32 %v407_v4, %v406_v3  ;;  %v2059_v8 = vld [vmem:[#allocation8] sm:$0xff]   ;;  %v478_v9 = vpack.c.bf16 %v406_v3, %v406_v3  ;;  %v1914_v10 = vld [vmem:[%s2816_s3] ss:$0 sm:$0xff]  ;;  %s2312_s16 = smov 96   ;;  %s2313_s18 = smov 112   ;;  %v561_v34 = vshrl.u32 %v560_v29, 7 }
  0x7b   : > { %1947 = vmatpush3.bf16.msra.mxu0 %v2056_v1  ;;  %1955 = vmatpush3.bf16.msra.mxu1 %v2058_v6  ;;  %v1918_v16 = vld [vmem:[%s2818_s5] ss:$0 sm:$0xff]  ;;  %v2314_v27 = vmov 1983009808   ;;  %v2315_v31 = vmov 1934713408  }
  0x7c   : > { %1948 = vmatprep.subr.bf16.mxu0 %v2308_v0  ;;  %v409_v7 = vpack.c.bf16 %v408_v5, %v408_v5  ;;  %1956 = vmatprep.subr.bf16.mxu1 %v2308_v0  ;;  %v558_v28 = vunpack.c.l.s4 %v2314_v27  ;;  %v590_v32 = vunpack.c.l.s4 %v2315_v31  ;;  %s2595_s24 = sshll.u32 %s2528_s23, 4  ;;  %vm695_vm2 = vcmask 60416   ;;  %s2651_s21 = sshll.u32 %s2387_s9, 8 }
  0x7d   : > { %s2598_s26 = scalar_lea.vmem [#allocation10], %s2595_s24  ;;  %s2661_s10 = scalar_lea.hbm %s2819_s6, %s2651_s21 }
  0x7e   : > { %v559_v33 = vunpack.c.0.s8 %v558_v28  ;;  %v591_v37 = vunpack.c.0.s8 %v590_v32  ;;  %s1689_s13 = sshll.u32 %s2598_s26, 4  ;;  %s1666_s15 = scalar_lea.sflag [#allocation4], %s2528_s23  ;;  %s2668_s13 = int_to_ptr.vmem [resolvable:$true] %s1689_s13 }
  0x7f   : > { %1949 = vmatpush3.bf16.msra.mxu0 %v2057_v2  ;;  %1957 = vmatpush3.bf16.msra.mxu1 %v2059_v8  ;;  %s2168_s11 = scalar_lea.vmem %s2668_s13, 256  ;;  %p2850_p7 = scmp.ne.s32.totalorder %s2841_s17, 0 }
  0x80   : > { %v2574_v38 = vsub.s32 %v559_v33, %v561_v34  ;;  %v2576_v44 = vsub.s32 %v591_v37, %v561_v34  ;;  %p2169_p12 = scmp.ne.s32.totalorder %s2668_s13, %s2168_s11  ;;  %s2316_s29 = smov [#allocation10]  }
  0x82   : > { %1951 = vmatmul.mubr.msk.bf16.vlgmr.msra.gmra.mxu0 %vm433_vm1, %v409_v7  ;;  %1959 = vmatmul.mubr.msk.bf16.vlgmr.msra.gmra.mxu1 %vm433_vm1, %v478_v9  ;;  %p2170_p9 = pnand %p2169_p12, %p2850_p7 }
  0x84   : > { %p2171_p13 = pneg %p2170_p9 }
 0x142   : > { %v471_v11 = vpop.f32.mrf.mxu0  ;;  %v539_v14 = vpop.f32.mrf.mxu1 }
 0x143   : > { %v472_v12 = vadd.f32 %v1914_v10, %v471_v11  ;;  %v2565_v19 = vadd.f32 %v1918_v16, %v539_v14 }
 0x144   : > { %v1952_v13 = vpop.f32.mrf.mxu0  ;;  %v1960_v17 = vpop.f32.mrf.mxu1 }
 0x145   : > { %705 = vrot.lane.b32.xlu1 %v472_v12, %s2310_s14  ;;  %701 = vrot.lane.b32.xlu0 %v472_v12, %s2311_s22  ;;  %v477_v21 = vmul.f32 0.35355338, %v472_v12 }
 0x146   : > { %v474_v15 = vpop.f32.mrf.mxu0  ;;  %v542_v20 = vpop.f32.mrf.mxu1 }
 0x148   : > { %v1953_v18 = vpop.f32.mrf.mxu0  ;;  %v1961_v22 = vpop.f32.mrf.mxu1 }
 0x149   : > { %707 = vrot.lane.b32.xlu1 %v472_v12, %s2312_s16  ;;  %703 = vrot.lane.b32.xlu0 %v472_v12, %s2313_s18 }
 0x14d   : > { %1512 = vrot.lane.b32.xlu1 %v2565_v19, %s2311_s22  ;;  %549 = vrot.lane.b32.xlu0 %v477_v21, %s2313_s18 }
 0x151   : > { %546 = vrot.lane.b32.xlu1 %v477_v21, %s2311_s22 }
 0x155   : > { %552 = vrot.lane.b32.xlu1 %v477_v21, %s2310_s14 }
 0x1b7   : > { %v706_v23 = vpop.permute.xlu1 %705  ;;  %v702_v24 = vpop.permute.xlu0 %701 }
 0x1b8   : > { %709 = vrot.lane.b32.xlu0 %v702_v24, %s2312_s16 }
 0x1bb   : > { %v2570_v25 = vpop.permute.xlu1 %707  ;;  %v704_v26 = vpop.permute.xlu0 %703 }
 0x1bc   : > { %713 = vrot.lane.b32.xlu0 %v706_v23, %s2312_s16  ;;  %711 = vrot.lane.b32.xlu1 %v704_v26, %s2312_s16 }
 0x1bf   : > { %v2572_v30 = vpop.permute.xlu1 %1512  ;;  %v550_v35 = vpop.permute.xlu0 %549 }
 0x1c0   : > { %v555_v39 = vcombine.low %v477_v21, %v550_v35  ;;  %v556_v40 = vcombine.high %v477_v21, %v550_v35 }
 0x1c2   : > { %v563_v45 = vrot.slane %v555_v39, %v2574_v38  ;;  %v570_v46 = vrot.slane %v556_v40, %v2574_v38 }
 0x1c3   : > { %v547_v36 = vpop.permute.xlu1 %546 }
 0x1c7   : > { %v553_v41 = vpop.permute.xlu1 %552 }
 0x1c8   : > { %v571_v42 = vcombine.low %v547_v36, %v553_v41  ;;  %v572_v43 = vcombine.high %v547_v36, %v553_v41 }
 0x1ca   : > { %v579_v47 = vrot.slane %v571_v42, %v2574_v38  ;;  %v586_v48 = vrot.slane %v572_v43, %v2574_v38 }
 0x1cc   : > { %v587_v49 = vcombine.low %v563_v45, %v579_v47  ;;  %v588_v50 = vcombine.high %v563_v45, %v579_v47  ;;  %v603_v51 = vcombine.low %v570_v46, %v586_v48  ;;  %v604_v52 = vcombine.high %v570_v46, %v586_v48 }
 0x1ce   : > { %v595_v53 = vrot.slane %v587_v49, %v2576_v44  ;;  %v602_v54 = vrot.slane %v588_v50, %v2576_v44  ;;  %v611_v55 = vrot.slane %v603_v51, %v2576_v44  ;;  %v618_v56 = vrot.slane %v604_v52, %v2576_v44 }
 0x1d0   : > { %v623_v57 = vcombine.low %v595_v53, %v602_v54  ;;  %v1922_v58 = vcombine.high %v595_v53, %v602_v54  ;;  %v639_v59 = vcombine.low %v611_v55, %v618_v56  ;;  %v1923_v60 = vcombine.high %v611_v55, %v618_v56 }
 0x1d2   : > { %v630_v61 = vrot.slane %v623_v57, %v2574_v38  ;;  %v638_v62 = vrot.slane %v1922_v58, %v2574_v38  ;;  %v646_v63 = vrot.slane %v639_v59, %v2574_v38  ;;  %v654_v1 = vrot.slane %v1923_v60, %v2574_v38 }
 0x1d4   : > { %v655_v2 = vcombine.low %v630_v61, %v638_v62  ;;  %v656_v3 = vcombine.high %v630_v61, %v638_v62  ;;  %v671_v4 = vcombine.low %v646_v63, %v654_v1  ;;  %v672_v5 = vcombine.high %v646_v63, %v654_v1 }
 0x1d6   : > { %v663_v6 = vrot.slane %v655_v2, %v2576_v44  ;;  %v670_v7 = vrot.slane %v656_v3, %v2576_v44  ;;  %v679_v8 = vrot.slane %v671_v4, %v2576_v44  ;;  %v686_v9 = vrot.slane %v672_v5, %v2576_v44 }
 0x1d8   : > { %v687_v10 = vcombine.low %v663_v6, %v679_v8  ;;  %v688_v11 = vcombine.high %v663_v6, %v679_v8  ;;  %v689_v12 = vcombine.low %v670_v7, %v686_v9  ;;  %v690_v13 = vcombine.high %v670_v7, %v686_v9 }
 0x1da   : > { %v691_v14 = vpack.c.bf16 %v687_v10, %v687_v10  ;;  %v692_v15 = vpack.c.bf16 %v688_v11, %v688_v11  ;;  %v693_v16 = vpack.c.bf16 %v689_v12, %v689_v12  ;;  %v694_v17 = vpack.c.bf16 %v690_v13, %v690_v13 }
 0x1dc   : > { %696 = vst.msk [vmem:[%s2598_s26] sm:$0xf] %vm695_vm2, %v691_v14  ;;  %697 = vst.msk [vmem:[%s2598_s26 + $0x4] sm:$0xf] %vm695_vm2, %v692_v15 }
 0x1dd   : > { %698 = vst.msk [vmem:[%s2598_s26 + $0x8] sm:$0xf] %vm695_vm2, %v693_v16  ;;  %699 = vst.msk [vmem:[%s2598_s26 + $0xc] sm:$0xf] %vm695_vm2, %v694_v17 }
 0x22a   : > { %v710_v18 = vpop.permute.xlu0 %709 }
 0x22e   : > { %v714_v20 = vpop.permute.xlu0 %713  ;;  %v712_v21 = vpop.permute.xlu1 %711 }
 0x22f   : > { %v735_v22 = vcombine.low %v710_v18, %v714_v20  ;;  %v736_v23 = vcombine.high %v710_v18, %v714_v20  ;;  %v719_v24 = vcombine.low %v2570_v25, %v712_v21  ;;  %v720_v26 = vcombine.high %v2570_v25, %v712_v21 }
 0x231   : > { %v743_v27 = vrot.slane %v735_v22, %v2574_v38  ;;  %v750_v28 = vrot.slane %v736_v23, %v2574_v38  ;;  %v727_v29 = vrot.slane %v719_v24, %v2574_v38  ;;  %v734_v31 = vrot.slane %v720_v26, %v2574_v38 }
 0x233   : > { %v752_v32 = vcombine.high %v727_v29, %v743_v27  ;;  %v751_v33 = vcombine.low %v727_v29, %v743_v27  ;;  %v767_v36 = vcombine.low %v734_v31, %v750_v28  ;;  %v768_v39 = vcombine.high %v734_v31, %v750_v28 }
 0x235   : > { %v766_v34 = vrot.slane %v752_v32, %v2576_v44  ;;  %v759_v35 = vrot.slane %v751_v33, %v2576_v44  ;;  %v775_v37 = vrot.slane %v767_v36, %v2576_v44  ;;  %v782_v40 = vrot.slane %v768_v39, %v2576_v44 }
 0x237   : > { %851 = vxpose.xlu0.b32.start.end [1/1] (short) (narrow) %v766_v34, 8  ;;  %787 = vxpose.xlu1.b32.start.end [1/1] (short) (narrow) %v759_v35, 8  ;;  %v783_v25 = vcombine.high %v759_v35, %v2308_v0  ;;  %v784_v41 = vcombine.high %v766_v34, %v2308_v0  ;;  %v785_v42 = vcombine.high %v775_v37, %v2308_v0 }
 0x238   : > { %v786_v43 = vcombine.high %v782_v40, %v2308_v0 }
 0x23b   : > { %915 = vxpose.xlu1.b32.start.end [1/1] (short) (narrow) %v775_v37, 8  ;;  %819 = vxpose.xlu0.b32.start.end [1/1] (short) (narrow) %v783_v25, 8 }
 0x23f   : > { %979 = vxpose.xlu1.b32.start.end [1/1] (short) (narrow) %v782_v40, 8  ;;  %883 = vxpose.xlu0.b32.start.end [1/1] (short) (narrow) %v784_v41, 8 }
 0x243   : > { %947 = vxpose.xlu0.b32.start.end [1/1] (short) (narrow) %v785_v42, 8 }
 0x247   : > { %1011 = vxpose.xlu0.b32.start.end [1/1] (short) (narrow) %v786_v43, 8 }
 0x25d   : > { %1515 = vrot.lane.b32.xlu1 %v2565_v19, %s2313_s18 }
 0x270   : > { %1518 = vrot.lane.b32.xlu0 %v2565_v19, %s2310_s14  ;;  %s2172_s14 = sshll.u32 %s2316_s29, 4  ;;  %s2173_s14 = int_to_ptr.vmem [resolvable:$false] %s2172_s14 }
 0x271   : > { %s2174_s22 = scalar_lea.vmem %s2173_s14, 512  ;;  %p2175_p5 = scmp.lt.s32.totalorder %s2668_s13, %s2173_s14 }
 0x272   : > { %p2176_p1 = scmp.lt.s32.totalorder %s2174_s22, %s2168_s11 }
 0x274   : > { %p2177_p3 = por %p2176_p1, %p2175_p5 }
 0x276   : > { %p2178_p4 = pnand %p2177_p3, %p2171_p13 }
 0x2b3   : > { %v867_v45 = vpop.trf.xlu0  ;;  %v803_v46 = vpop.trf.xlu1 }
 0x2b4   : > { %v1043_v53 = vcombine.low %v803_v46, %v867_v45  ;;  %v1044_v58 = vcombine.high %v803_v46, %v867_v45 }
 0x2b6   : > { %v1051_v59 = vrot.slane %v1043_v53, %v2574_v38  ;;  %v1058_v5 = vrot.slane %v1044_v58, %v2574_v38 }
 0x2b7   : > { %v835_v47 = vpop.trf.xlu0  ;;  %v931_v48 = vpop.trf.xlu1 }
 0x2bb   : > { %v899_v49 = vpop.trf.xlu0  ;;  %v995_v51 = vpop.trf.xlu1 }
 0x2bc   : > { %v1059_v50 = vcombine.low %v835_v47, %v899_v49  ;;  %v1060_v54 = vcombine.high %v835_v47, %v899_v49  ;;  %v1075_v55 = vcombine.low %v931_v48, %v995_v51  ;;  %v1076_v56 = vcombine.high %v931_v48, %v995_v51 }
 0x2be   : > { %v1067_v0 = vrot.slane %v1059_v50, %v2574_v38  ;;  %v1074_v62 = vrot.slane %v1060_v54, %v2574_v38  ;;  %v1083_v63 = vrot.slane %v1075_v55, %v2574_v38  ;;  %v1090_v2 = vrot.slane %v1076_v56, %v2574_v38 }
 0x2bf   : > { %v963_v52 = vpop.trf.xlu0 }
 0x2c0   : > { %v1107_v1 = vcombine.low %v1051_v59, %v1067_v0  ;;  %v1108_v11 = vcombine.high %v1051_v59, %v1067_v0  ;;  %v1123_v12 = vcombine.low %v1058_v5, %v1074_v62  ;;  %v1124_v21 = vcombine.high %v1058_v5, %v1074_v62 }
 0x2c2   : > { %v1115_v9 = vrot.slane %v1107_v1, %v2576_v44  ;;  %v1122_v18 = vrot.slane %v1108_v11, %v2576_v44  ;;  %v1131_v20 = vrot.slane %v1123_v12, %v2576_v44  ;;  %v1138_v26 = vrot.slane %v1124_v21, %v2576_v44 }
 0x2c3   : > { %v1027_v57 = vpop.trf.xlu0 }
 0x2c4   : > { %v1091_v60 = vcombine.low %v963_v52, %v1027_v57  ;;  %v1092_v61 = vcombine.high %v963_v52, %v1027_v57 }
 0x2c6   : > { %v1099_v3 = vrot.slane %v1091_v60, %v2574_v38  ;;  %v1106_v4 = vrot.slane %v1092_v61, %v2574_v38 }
 0x2c8   : > { %v1139_v6 = vcombine.low %v1083_v63, %v1099_v3  ;;  %v1140_v7 = vcombine.high %v1083_v63, %v1099_v3  ;;  %v1155_v8 = vcombine.low %v1090_v2, %v1106_v4  ;;  %v1156_v13 = vcombine.high %v1090_v2, %v1106_v4 }
 0x2ca   : > { %v1147_v10 = vrot.slane %v1139_v6, %v2576_v44  ;;  %v1154_v16 = vrot.slane %v1140_v7, %v2576_v44  ;;  %v1163_v17 = vrot.slane %v1155_v8, %v2576_v44  ;;  %v1170_v24 = vrot.slane %v1156_v13, %v2576_v44 }
 0x2cc   : > { %v1172_v14 = vcombine.high %v1115_v9, %v1147_v10  ;;  %v1171_v15 = vcombine.low %v1115_v9, %v1147_v10  ;;  %v1173_v22 = vcombine.low %v1122_v18, %v1154_v16  ;;  %v1175_v23 = vcombine.low %v1131_v20, %v1163_v17 }
 0x2cd   : > { %v1174_v27 = vcombine.high %v1122_v18, %v1154_v16  ;;  %v1177_v28 = vcombine.low %v1138_v26, %v1170_v24  ;;  %v1176_v29 = vcombine.high %v1131_v20, %v1163_v17  ;;  %v1178_v31 = vcombine.high %v1138_v26, %v1170_v24 }
 0x2ce   : > { %1211 = vxpose.xlu0.b32.start.end [1/1] (short) (narrow) %v1172_v14, 8  ;;  %1179 = vxpose.xlu1.b32.start.end [1/1] (short) (narrow) %v1171_v15, 8 }
 0x2cf   : > { %v1516_v32 = vpop.permute.xlu1 %1515 }
 0x2d0   : > { %v1521_v33 = vcombine.low %v2565_v19, %v1516_v32  ;;  %v1522_v34 = vcombine.high %v2565_v19, %v1516_v32 }
 0x2d2   : > { %1243 = vxpose.xlu0.b32.start.end [1/1] (short) (narrow) %v1173_v22, 8  ;;  %1307 = vxpose.xlu1.b32.start.end [1/1] (short) (narrow) %v1175_v23, 8  ;;  %v1529_v25 = vrot.slane %v1521_v33, %v2574_v38  ;;  %v1536_v39 = vrot.slane %v1522_v34, %v2574_v38 }
 0x2d6   : > { %1275 = vxpose.xlu0.b32.start.end [1/1] (short) (narrow) %v1174_v27, 8  ;;  %1371 = vxpose.xlu1.b32.start.end [1/1] (short) (narrow) %v1177_v28, 8 }
 0x2da   : > { %1339 = vxpose.xlu0.b32.start.end [1/1] (short) (narrow) %v1176_v29, 8 }
 0x2de   : > { %1403 = vxpose.xlu0.b32.start.end [1/1] (short) (narrow) %v1178_v31, 8 }
 0x2e2   : > { %v1519_v35 = vpop.permute.xlu0 %1518 }
 0x2e3   : > { %v1537_v36 = vcombine.low %v2572_v30, %v1519_v35  ;;  %v1538_v37 = vcombine.high %v2572_v30, %v1519_v35 }
 0x2e5   : > { %v1545_v40 = vrot.slane %v1537_v36, %v2574_v38  ;;  %v1552_v41 = vrot.slane %v1538_v37, %v2574_v38 }
 0x2e7   : > { %v1553_v42 = vcombine.low %v1529_v25, %v1545_v40  ;;  %v1554_v43 = vcombine.high %v1529_v25, %v1545_v40  ;;  %v1569_v45 = vcombine.low %v1536_v39, %v1552_v41  ;;  %v1570_v46 = vcombine.high %v1536_v39, %v1552_v41 }
 0x2e9   : > { %v1561_v19 = vrot.slane %v1553_v42, %v2576_v44  ;;  %v1568_v30 = vrot.slane %v1554_v43, %v2576_v44  ;;  %v1577_v47 = vrot.slane %v1569_v45, %v2576_v44  ;;  %v1584_v48 = vrot.slane %v1570_v46, %v2576_v44 }
 0x2eb   : > { %v1589_v49 = vcombine.low %v1561_v19, %v1568_v30  ;;  %v1924_v50 = vcombine.high %v1561_v19, %v1568_v30  ;;  %v1605_v51 = vcombine.low %v1577_v47, %v1584_v48  ;;  %v1925_v52 = vcombine.high %v1577_v47, %v1584_v48 }
 0x2ed   : > { %v1596_v53 = vrot.slane %v1589_v49, %v2574_v38  ;;  %v1604_v54 = vrot.slane %v1924_v50, %v2574_v38  ;;  %v1612_v55 = vrot.slane %v1605_v51, %v2574_v38  ;;  %v1620_v0 = vrot.slane %v1925_v52, %v2574_v38 }
 0x2ee   : > { %2181 = shalt.err (!%p2178_p4)
}
 0x2ef   : > { %s2182_s19 = scalar_lea.hbm %s2661_s10, 256  ;;  %s2186_s18 = scalar_lea.hbm %s2819_s6, 512 }
 0x2f0   : > { %p2183_p10 = scmp.ne.s32.totalorder %s2661_s10, %s2182_s19  ;;  %p2187_p11 = scmp.lt.s32.totalorder %s2661_s10, %s2819_s6 }
 0x2f1   : > { %p2188_p2 = scmp.lt.s32.totalorder %s2186_s18, %s2182_s19 }
 0x2f2   : > { %p2184_p0 = pnand %p2183_p10, %p2850_p7 }
 0x2f3   : > { %p2189_p6 = por %p2188_p2, %p2187_p11 }
 0x2f4   : > { %p2185_p8 = pneg %p2184_p0 }
 0x2f6   : > { %p2190_p12 = pnand %p2189_p6, %p2185_p8 }
 0x2f8   : > { %2193 = shalt.err (!%p2190_p12)
}
 0x2f9   : > { %s2317_s25 = smov 64   ;;  %s2318_s11 = smov 4   ;;  %v1621_v56 = vcombine.low %v1596_v53, %v1604_v54  ;;  %v1622_v57 = vcombine.high %v1596_v53, %v1604_v54  ;;  %v1637_v58 = vcombine.low %v1612_v55, %v1620_v0  ;;  %v1638_v59 = vcombine.high %v1612_v55, %v1620_v0 }
 0x2fa   : > { %1974 = dma.vmem_to_hbm [thread:$0]  (%p2850_p7), %s2668_s13, 256, %s2661_s10, %s1666_s15, %s2317_s25, %s2317_s25, %s2318_s11  }
 0x2fb   : > { %v1629_v60 = vrot.slane %v1621_v56, %v2576_v44  ;;  %v1636_v61 = vrot.slane %v1622_v57, %v2576_v44  ;;  %v1645_v62 = vrot.slane %v1637_v58, %v2576_v44  ;;  %v1652_v63 = vrot.slane %v1638_v59, %v2576_v44  ;;  %s2701_s23 = scalar_lea.vmem [#allocation13], %s2595_s24  ;;  %s397_s10 = scalar_lea.vmem [#allocation11], %s2595_s24 }
 0x2fc   : > { %s1705_s13 = sshll.u32 %s397_s10, 4  ;;  %s1721_s15 = sshll.u32 %s2701_s23, 4  ;;  %s2727_s13 = int_to_ptr.vmem [resolvable:$true] %s1705_s13  ;;  %s2735_s15 = int_to_ptr.vmem [resolvable:$true] %s1721_s15 }
 0x2fd   : > { %v1653_v1 = vcombine.low %v1629_v60, %v1645_v62  ;;  %v1654_v2 = vcombine.high %v1629_v60, %v1645_v62  ;;  %v1655_v3 = vcombine.low %v1636_v61, %v1652_v63  ;;  %v1656_v4 = vcombine.high %v1636_v61, %v1652_v63  ;;  %s2725_s22 = scalar_lea.hbm %s2820_s7, %s2651_s21  ;;  %s2733_s20 = scalar_lea.hbm %s2821_s8, %s2651_s21 }
 0x2fe   : > { %s2743_s16 = scalar_lea.sflag [#allocation12], %s345_s2  ;;  %s2194_s18 = scalar_lea.vmem %s2727_s13, 256 }
 0x2ff   : > { %v1657_v5 = vpack.c.bf16 %v1653_v1, %v1653_v1  ;;  %v1658_v6 = vpack.c.bf16 %v1654_v2, %v1654_v2  ;;  %v1659_v7 = vpack.c.bf16 %v1655_v3, %v1655_v3  ;;  %v1660_v8 = vpack.c.bf16 %v1656_v4, %v1656_v4  ;;  %p2195_p9 = scmp.ne.s32.totalorder %s2727_s13, %s2194_s18  ;;  %s2319_s21 = smov [#allocation11]  }
 0x300   : > { %s2198_s26 = sshll.u32 %s2319_s21, 4  ;;  %s2199_s26 = int_to_ptr.vmem [resolvable:$false] %s2198_s26 }
 0x301   : > { %1661 = vst.msk [vmem:[%s2701_s23] sm:$0xf] %vm695_vm2, %v1657_v5  ;;  %1662 = vst.msk [vmem:[%s2701_s23 + $0x4] sm:$0xf] %vm695_vm2, %v1658_v6  ;;  %p2196_p13 = pnand %p2195_p9, %p2850_p7  ;;  %s2200_s4 = scalar_lea.vmem %s2199_s26, 512 }
 0x302   : > { %1663 = vst.msk [vmem:[%s2701_s23 + $0x8] sm:$0xf] %vm695_vm2, %v1659_v7  ;;  %1664 = vst.msk [vmem:[%s2701_s23 + $0xc] sm:$0xf] %vm695_vm2, %v1660_v8  ;;  %p2201_p1 = scmp.lt.s32.totalorder %s2727_s13, %s2199_s26  ;;  %p2202_p3 = scmp.lt.s32.totalorder %s2200_s4, %s2194_s18 }
 0x303   : > { %p2197_p5 = pneg %p2196_p13 }
 0x304   : > { %p2203_p4 = por %p2202_p3, %p2201_p1 }
 0x306   : > { %p2204_p10 = pnand %p2203_p4, %p2197_p5 }
 0x34a   : > { %v1227_v9 = vpop.trf.xlu0  ;;  %v1195_v10 = vpop.trf.xlu1 }
 0x34e   : > { %v1259_v11 = vpop.trf.xlu0  ;;  %v1323_v12 = vpop.trf.xlu1 }
 0x34f   : > { %v1435_v17 = vcombine.low %v1195_v10, %v1259_v11 }
 0x351   : > { %v1442_v22 = vrot.slane %v1435_v17, %v2574_v38 }
 0x352   : > { %v1291_v13 = vpop.trf.xlu0  ;;  %v1387_v15 = vpop.trf.xlu1 }
 0x353   : > { %v1443_v14 = vcombine.low %v1227_v9, %v1291_v13  ;;  %v1451_v20 = vcombine.low %v1323_v12, %v1387_v15 }
 0x355   : > { %v1450_v18 = vrot.slane %v1443_v14, %v2574_v38  ;;  %v1458_v27 = vrot.slane %v1451_v20, %v2574_v38 }
 0x356   : > { %v1355_v16 = vpop.trf.xlu0 }
 0x357   : > { %v1467_v24 = vcombine.low %v1442_v22, %v1450_v18  ;;  %v1468_v26 = vcombine.high %v1442_v22, %v1450_v18 }
 0x359   : > { %v1475_v32 = vrot.slane %v1467_v24, %v2576_v44  ;;  %v1482_v33 = vrot.slane %v1468_v26, %v2576_v44 }
 0x35a   : > { %v1419_v21 = vpop.trf.xlu0 }
 0x35b   : > { %v1459_v23 = vcombine.low %v1355_v16, %v1419_v21 }
 0x35d   : > { %v1466_v28 = vrot.slane %v1459_v23, %v2574_v38 }
 0x35f   : > { %v1483_v29 = vcombine.low %v1458_v27, %v1466_v28  ;;  %v1484_v31 = vcombine.high %v1458_v27, %v1466_v28 }
 0x361   : > { %v1491_v34 = vrot.slane %v1483_v29, %v2576_v44  ;;  %v1498_v35 = vrot.slane %v1484_v31, %v2576_v44 }
 0x363   : > { %v1499_v36 = vcombine.low %v1475_v32, %v1491_v34  ;;  %v1500_v37 = vcombine.high %v1475_v32, %v1491_v34  ;;  %v1501_v25 = vcombine.low %v1482_v33, %v1498_v35  ;;  %v1502_v39 = vcombine.high %v1482_v33, %v1498_v35 }
 0x365   : > { %v1503_v38 = vpack.c.bf16 %v1499_v36, %v1499_v36  ;;  %v1504_v40 = vpack.c.bf16 %v1500_v37, %v1500_v37  ;;  %v1505_v41 = vpack.c.bf16 %v1501_v25, %v1501_v25  ;;  %v1506_v42 = vpack.c.bf16 %v1502_v39, %v1502_v39 }
 0x367   : > { %1507 = vst.msk [vmem:[%s397_s10] sm:$0xf] %vm695_vm2, %v1503_v38  ;;  %1508 = vst.msk [vmem:[%s397_s10 + $0x4] sm:$0xf] %vm695_vm2, %v1504_v40 }
 0x368   : > { %1509 = vst.msk [vmem:[%s397_s10 + $0x8] sm:$0xf] %vm695_vm2, %v1505_v41  ;;  %1510 = vst.msk [vmem:[%s397_s10 + $0xc] sm:$0xf] %vm695_vm2, %v1506_v42 }
 0x369   : > { %2207 = shalt.err (!%p2204_p10)
}
 0x36a   : > { %s2208_s9 = scalar_lea.hbm %s2725_s22, 256  ;;  %s2212_s10 = scalar_lea.hbm %s2820_s7, 512 }
 0x36b   : > { %p2209_p0 = scmp.ne.s32.totalorder %s2725_s22, %s2208_s9  ;;  %p2213_p2 = scmp.lt.s32.totalorder %s2725_s22, %s2820_s7 }
 0x36c   : > { %p2214_p6 = scmp.lt.s32.totalorder %s2212_s10, %s2208_s9 }
 0x36d   : > { %p2210_p8 = pnand %p2209_p0, %p2850_p7 }
 0x36e   : > { %p2215_p12 = por %p2214_p6, %p2213_p2 }
 0x36f   : > { %p2211_p11 = pneg %p2210_p8 }
 0x371   : > { %p2216_p9 = pnand %p2215_p12, %p2211_p11 }
 0x373   : > { %2219 = shalt.err (!%p2216_p9)
}
 0x374   : > { %1975 = dma.vmem_to_hbm [thread:$0]  (%p2850_p7), %s2727_s13, 256, %s2725_s22, %s2743_s16, %s2317_s25, %s2317_s25, %s2318_s11  }
 0x375   : > { %s2220_s24 = scalar_lea.vmem %s2735_s15, 256  ;;  %s2320_s19 = smov [#allocation13]  }
 0x376   : > { %p2221_p13 = scmp.ne.s32.totalorder %s2735_s15, %s2220_s24  ;;  %s2224_s18 = sshll.u32 %s2320_s19, 4  ;;  %s2225_s18 = int_to_ptr.vmem [resolvable:$false] %s2224_s18 }
 0x377   : > { %s2226_s21 = scalar_lea.vmem %s2225_s18, 512  ;;  %p2227_p3 = scmp.lt.s32.totalorder %s2735_s15, %s2225_s18 }
 0x378   : > { %p2222_p5 = pnand %p2221_p13, %p2850_p7  ;;  %p2228_p4 = scmp.lt.s32.totalorder %s2226_s21, %s2220_s24 }
 0x37a   : > { %p2223_p1 = pneg %p2222_p5  ;;  %p2229_p10 = por %p2228_p4, %p2227_p3 }
 0x37c   : > { %p2230_p0 = pnand %p2229_p10, %p2223_p1 }
 0x37e   : > { %2233 = shalt.err (!%p2230_p0)
}
 0x37f   : > { %s2234_s26 = scalar_lea.hbm %s2733_s20, 256  ;;  %s2238_s4 = scalar_lea.hbm %s2821_s8, 512 }
 0x380   : > { %p2235_p8 = scmp.ne.s32.totalorder %s2733_s20, %s2234_s26  ;;  %p2239_p6 = scmp.lt.s32.totalorder %s2733_s20, %s2821_s8 }
 0x381   : > { %p2240_p12 = scmp.lt.s32.totalorder %s2238_s4, %s2234_s26 }
 0x382   : > { %p2236_p11 = pnand %p2235_p8, %p2850_p7 }
 0x383   : > { %p2241_p9 = por %p2240_p12, %p2239_p6 }
 0x384   : > { %p2237_p2 = pneg %p2236_p11 }
 0x386   : > { %p2242_p13 = pnand %p2241_p9, %p2237_p2 }
 0x388   : > { %2245 = shalt.err (!%p2242_p13)
}
 0x389   : > { %1976 = dma.vmem_to_hbm [thread:$0]  (%p2850_p7), %s2735_s15, 256, %s2733_s20, %s2743_s16, %s2317_s25, %s2317_s25, %s2318_s11  }
 0x38a PF: > { %s1736_s23 = sand.u32 1, %s2288_s27   ;;  %p2851_p5 = scmp.ne.s32.totalorder %s2834_s12, 0 }
 0x38b   : > { %p2852_p1 = scmp.ge.s32.totalorder %s2300_s30, 2  ;;  %s1737_s10 = scalar_lea.sflag [#allocation4], %s1736_s23 }
 0x38d   : > { %p1995_p3 = pnand %p2852_p1, %p2851_p5 }
 0x38f   : > { %p1996_p4 = pneg %p1995_p3 }
 0x391   : > { %2279 = dma.done.wait (%p1996_p4), %s1737_s10, 256  }
 0x392   : > { %2281 = vsyncadd (%p1996_p4), %s1737_s10, 4294967040  ;;  %s2853_s17 = sadd.s32 4294967294, %s2300_s30  }
 0x393   : > { %s1745_s29 = sand.u32 1, %s2853_s17  }
 0x394   : > { %s1746_s14 = scalar_lea.sflag [#allocation12], %s1745_s29 }
 0x395   : > { %2283 = dma.done.wait (%p1996_p4), %s1746_s14, 512  }
 0x396   : > { %2285 = vsyncadd (%p1996_p4), %s1746_s14, 4294966784  ;;  %s2854_s30 = sld [smem:[#allocation21_spill]]  ;;  %s2857_s27 = smov %s2292_s28 }
 0x397   : > { %s2855_s25 = sld [smem:[#allocation20_spill]] }
 0x398   : > { %s2856_s29 = sld [smem:[#allocation22_spill]] }
 0x39c   : > { %p29_p7 = scmp.ge.s32.totalorder %s2854_s30, 4  }
 0x39d   : > { %s2858_s28 = smov %s2855_s25 }
 0x39e   :  { %31 = sbr.rel (!%p29_p7) target bundleno = 13 (0xd), region = 142 }
 0x3a3   :  { %1760 = vsyncpa [#allocation3], 1 }
 0x3a4   :  { %1762 = vsyncpa [#allocation3 + $0x1], 1 }
 0x3a5   :  { %1763 = vsyncpa [#allocation6], 1 }
 0x3a6   :  { %1765 = vsyncpa [#allocation6 + $0x1], 1 }
 0x3a7   :  { %1766 = vsyncpa [#allocation9], 1 }
 0x3a8   :  { %1767 = vsyncpa [#allocation4], 1 }
 0x3a9   :  { %1769 = vsyncpa [#allocation4 + $0x1], 1 }
 0x3aa   :  { %1770 = vsyncpa [#allocation12], 1 }
 0x3ab   :  { %1772 = vsyncpa [#allocation12 + $0x1], 1 }

</bundles_post_ra>
